<compile_context>
chip_gen: v7x
topology: tpu7x:2x2x1
jax: 0.10.0
libtpu: 0.0.40
codegen_flags: <defaults>
</compile_context>

<pallas_src>
import jax
import jax.numpy as jnp
from jax import lax
from jax.experimental import pallas as pl
from jax.experimental.pallas import tpu as pltpu

# ----------------------------- model hyper-params (small BERT) -----------------------------
BATCH = 2
SEQ = 8
HIDDEN = 32
NUM_HEADS = 2
HEAD_DIM = HIDDEN // NUM_HEADS
INTERMEDIATE = 64
NUM_LAYERS = 2
VOCAB = 50
TYPE_VOCAB = 2
MAX_POS = 16
LN_EPS = 1e-12
OUT_LANES = 128          # lane-dense output width (only lane 0 is meaningful)


# ------------------------------ in-kernel helper math (values) -----------------------------
def _layernorm(x, g, b):
    # one-pass LN: both cross-lane reduces issued before any data-dependent broadcast
    inv_n = 1.0 / x.shape[-1]
    sx = jnp.sum(x, axis=-1, keepdims=True)
    sxx = jnp.sum(x * x, axis=-1, keepdims=True)
    mu = sx * inv_n
    var = sxx * inv_n - mu * mu
    return (x - mu) * lax.rsqrt(var + LN_EPS) * g + b


def _gelu(x):
    # tanh-approx GELU (HF BERT default is exact erf-GELU; difference is ~1e-3)
    return 0.5 * x * (1.0 + jnp.tanh(0.7978845608028654 * (x + 0.044715 * x * x * x)))


def _sigmoid(x):
    # numerically stable sigmoid via tanh (EUP, never overflows)
    return 0.5 * (jnp.tanh(0.5 * x) + 1.0)


# ----------------------------------- the fused kernel --------------------------------------
def _bert_kernel(emb_ref, mask_ref,
                 emb_ln_g_ref, emb_ln_b_ref,
                 wqkv_ref, bqkv_ref, wo_ref, bo_ref, ln1_g_ref, ln1_b_ref,
                 wi_ref, bi_ref, wo2_ref, bo2_ref, ln2_g_ref, ln2_b_ref,
                 pooler_w_ref, pooler_b_ref, cls_w_ref, cls_b_ref,
                 out_ref, ctx_ref):
    D, H, Dh = HIDDEN, NUM_HEADS, HEAD_DIM
    scale = 1.0 / (Dh ** 0.5)

    # embedding LayerNorm (f32)
    x = _layernorm(emb_ref[...], emb_ln_g_ref[...], emb_ln_b_ref[...])      # (B*S, D) f32
    amask = mask_ref[...]                                                    # (B*S, B*S) additive

    # ---------------- transformer layers (static unroll; everything resident in VMEM) -------
    for li in range(NUM_LAYERS):
        # fused QKV projection: bf16 operands, f32 accumulation -> (B*S, 3D) f32
        qkv = jnp.dot(x.astype(jnp.bfloat16), wqkv_ref[li],
                      preferred_element_type=jnp.float32) + bqkv_ref[li]

        # attention: batch folded into one block-diag-masked matmul per head
        for h in range(H):
            q = qkv[:, h * Dh:(h + 1) * Dh].astype(jnp.bfloat16)             # (B*S, Dh)
            k = qkv[:, D + h * Dh:D + (h + 1) * Dh].astype(jnp.bfloat16)
            v = qkv[:, 2 * D + h * Dh:2 * D + (h + 1) * Dh].astype(jnp.bfloat16)
            # q . k^T over all B*S rows at once (no explicit transpose)
            s = lax.dot_general(q, k, (((1,), (1,)), ((), ())),
                                preferred_element_type=jnp.float32) * scale + amask
            s = s - jnp.max(s, axis=-1, keepdims=True)
            p = jnp.exp(s)                                                   # cross-batch -> 0
            p = p * pl.reciprocal(jnp.sum(p, axis=-1, keepdims=True), approx=True)
            # write this head's context straight into the scratch at its lane offset
            ctx_ref[:, h * Dh:(h + 1) * Dh] = jnp.dot(
                p.astype(jnp.bfloat16), v, preferred_element_type=jnp.float32)

        # attention output projection + residual + LayerNorm
        attn_out = jnp.dot(ctx_ref[...].astype(jnp.bfloat16), wo_ref[li],
                           preferred_element_type=jnp.float32) + bo_ref[li]
        x = _layernorm(x + attn_out, ln1_g_ref[li], ln1_b_ref[li])

        # FFN (GELU) + residual + LayerNorm
        hmid = _gelu(jnp.dot(x.astype(jnp.bfloat16), wi_ref[li],
                             preferred_element_type=jnp.float32) + bi_ref[li])
        ffn = jnp.dot(hmid.astype(jnp.bfloat16), wo2_ref[li],
                      preferred_element_type=jnp.float32) + bo2_ref[li]
        x = _layernorm(x + ffn, ln2_g_ref[li], ln2_b_ref[li])

    # ---------------- pooler + classifier on ALL rows (same sub-tile MXU cost) --------------
    pooled = jnp.tanh(jnp.dot(x.astype(jnp.bfloat16), pooler_w_ref[...],
                              preferred_element_type=jnp.float32) + pooler_b_ref[...])
    logits = jnp.dot(pooled.astype(jnp.bfloat16), cls_w_ref[...],
                     preferred_element_type=jnp.float32) + cls_b_ref[...]    # (B*S, 128)
    out_ref[...] = _sigmoid(logits)   # lane-dense store; lane 0 of rows 0/S are the outputs


# --------------------------------- parameter construction ----------------------------------
def init_params(key):
    def nrm(k, shape, scale=0.02):
        return scale * jax.random.normal(k, shape, dtype=jnp.float32)

    keys = jax.random.split(key, 8 + NUM_LAYERS)
    p = {
        "word_emb": nrm(keys[0], (VOCAB, HIDDEN)),
        "pos_emb": nrm(keys[1], (MAX_POS, HIDDEN)),
        "tok_emb": nrm(keys[2], (TYPE_VOCAB, HIDDEN)),
        "emb_ln_g": jnp.ones((1, HIDDEN), jnp.float32),
        "emb_ln_b": jnp.zeros((1, HIDDEN), jnp.float32),
        "pooler_w": nrm(keys[3], (HIDDEN, HIDDEN)).astype(jnp.bfloat16),
        "pooler_b": jnp.zeros((1, HIDDEN), jnp.float32),
    }
    # final classifier: xavier_uniform_ like the PyTorch module, bias = 0; lane-padded to 128
    bound = (6.0 / (HIDDEN + 1)) ** 0.5
    cls_w = jax.random.uniform(keys[4], (HIDDEN, 1), jnp.float32, -bound, bound)
    p["cls_w"] = jnp.pad(cls_w, ((0, 0), (0, OUT_LANES - 1))).astype(jnp.bfloat16)
    p["cls_b"] = jnp.zeros((1, OUT_LANES), jnp.float32)

    wqkv, bqkv, wo, bo = [], [], [], []
    ln1g, ln1b, wi, bi, wo2, bo2, ln2g, ln2b = [], [], [], [], [], [], [], []
    for li in range(NUM_LAYERS):
        lk = jax.random.split(keys[8 + li], 8)
        wq = nrm(lk[0], (HIDDEN, HIDDEN))
        wk = nrm(lk[1], (HIDDEN, HIDDEN))
        wv = nrm(lk[2], (HIDDEN, HIDDEN))
        wqkv.append(jnp.concatenate([wq, wk, wv], axis=1))                  # (D, 3D)
        bqkv.append(jnp.zeros((1, 3 * HIDDEN), jnp.float32))
        wo.append(nrm(lk[3], (HIDDEN, HIDDEN)))
        bo.append(jnp.zeros((1, HIDDEN), jnp.float32))
        ln1g.append(jnp.ones((1, HIDDEN), jnp.float32))
        ln1b.append(jnp.zeros((1, HIDDEN), jnp.float32))
        wi.append(nrm(lk[4], (HIDDEN, INTERMEDIATE)))
        bi.append(jnp.zeros((1, INTERMEDIATE), jnp.float32))
        wo2.append(nrm(lk[5], (INTERMEDIATE, HIDDEN)))
        bo2.append(jnp.zeros((1, HIDDEN), jnp.float32))
        ln2g.append(jnp.ones((1, HIDDEN), jnp.float32))
        ln2b.append(jnp.zeros((1, HIDDEN), jnp.float32))

    # MXU-feeding weights in bf16 (f32 accumulation in-kernel); biases / LN params stay f32
    p["wqkv"] = jnp.stack(wqkv).astype(jnp.bfloat16)
    p["bqkv"] = jnp.stack(bqkv)
    p["wo"] = jnp.stack(wo).astype(jnp.bfloat16)
    p["bo"] = jnp.stack(bo)
    p["ln1_g"] = jnp.stack(ln1g)
    p["ln1_b"] = jnp.stack(ln1b)
    p["wi"] = jnp.stack(wi).astype(jnp.bfloat16)
    p["bi"] = jnp.stack(bi)
    p["wo2"] = jnp.stack(wo2).astype(jnp.bfloat16)
    p["bo2"] = jnp.stack(bo2)
    p["ln2_g"] = jnp.stack(ln2g)
    p["ln2_b"] = jnp.stack(ln2b)
    return p


# ------------------------------------- forward pass ----------------------------------------
def bert_similarity_forward(params, input_ids, token_type_ids, attention_mask):
    B, S = input_ids.shape
    D = HIDDEN

    # embeddings (gather = plain-JAX glue), summed before the in-kernel LayerNorm
    emb = (params["word_emb"][input_ids]
           + params["pos_emb"][jnp.arange(S)][None, :, :]
           + params["tok_emb"][token_type_ids]).reshape(B * S, D)            # (B*S, D) f32

    # block-diagonal additive mask over the flattened (B*S) key axis:
    #   within-batch: BERT-style (1 - mask) * -10000 ; cross-batch: -1e9 (exp underflows to 0)
    key_mask = ((1.0 - attention_mask.astype(jnp.float32)) * -10000.0).reshape(B * S)
    batch_ids = jnp.repeat(jnp.arange(B), S)
    same_batch = batch_ids[:, None] == batch_ids[None, :]                    # (B*S, B*S)
    full_mask = jnp.where(same_batch, key_mask[None, :], -1e9).astype(jnp.float32)

    args = (emb, full_mask,
            params["emb_ln_g"], params["emb_ln_b"],
            params["wqkv"], params["bqkv"], params["wo"], params["bo"],
            params["ln1_g"], params["ln1_b"],
            params["wi"], params["bi"], params["wo2"], params["bo2"],
            params["ln2_g"], params["ln2_b"],
            params["pooler_w"], params["pooler_b"], params["cls_w"], params["cls_b"])

    out = pl.pallas_call(
        _bert_kernel,
        out_shape=jax.ShapeDtypeStruct((B * S, OUT_LANES), jnp.float32),
        in_specs=[pl.BlockSpec(memory_space=pltpu.MemorySpace.VMEM) for _ in args],
        out_specs=pl.BlockSpec(memory_space=pltpu.MemorySpace.VMEM),
        scratch_shapes=[pltpu.VMEM((B * S, HIDDEN), jnp.float32)],           # attention ctx
    )(*args)

    # [CLS] rows are 0 and S; lane 0 carries the sigmoid similarity score.
    # PyTorch module does result.squeeze(): (B, 1) -> (B,)
    return {"output": out[::S, 0]}


# ---------------------------------------- driver -------------------------------------------
if __name__ == "__main__":
    key = jax.random.PRNGKey(0)
    pkey, ikey = jax.random.split(key)
    params = init_params(pkey)

    input_ids = jax.random.randint(ikey, (BATCH, SEQ), 0, VOCAB, dtype=jnp.int32)
    token_type_ids = jnp.concatenate(
        [jnp.zeros((BATCH, SEQ // 2), jnp.int32), jnp.ones((BATCH, SEQ // 2), jnp.int32)], axis=1)
    attention_mask = jnp.ones((BATCH, SEQ), jnp.int32).at[:, -1].set(0)      # mask last token

    fwd = jax.jit(bert_similarity_forward)
    result = fwd(params, input_ids, token_type_ids, attention_mask)
    out = jax.block_until_ready(result["output"])
    assert out.shape == (BATCH,)
    assert bool(jnp.all((out >= 0.0) & (out <= 1.0)))
    print("KERNEL_OK")
</pallas_src>

<mosaic_0001>
module attributes {stable_mosaic.version = 11 : i64} {
  func.func @_bert_kernel(%arg0: memref<16x32xf32, #tpu.memory_space<vmem>>, %arg1: memref<16x16xf32, #tpu.memory_space<vmem>>, %arg2: memref<1x32xf32, #tpu.memory_space<vmem>>, %arg3: memref<1x32xf32, #tpu.memory_space<vmem>>, %arg4: memref<2x32x96xbf16, #tpu.memory_space<vmem>>, %arg5: memref<2x1x96xf32, #tpu.memory_space<vmem>>, %arg6: memref<2x32x32xbf16, #tpu.memory_space<vmem>>, %arg7: memref<2x1x32xf32, #tpu.memory_space<vmem>>, %arg8: memref<2x1x32xf32, #tpu.memory_space<vmem>>, %arg9: memref<2x1x32xf32, #tpu.memory_space<vmem>>, %arg10: memref<2x32x64xbf16, #tpu.memory_space<vmem>>, %arg11: memref<2x1x64xf32, #tpu.memory_space<vmem>>, %arg12: memref<2x64x32xbf16, #tpu.memory_space<vmem>>, %arg13: memref<2x1x32xf32, #tpu.memory_space<vmem>>, %arg14: memref<2x1x32xf32, #tpu.memory_space<vmem>>, %arg15: memref<2x1x32xf32, #tpu.memory_space<vmem>>, %arg16: memref<32x32xbf16, #tpu.memory_space<vmem>>, %arg17: memref<1x32xf32, #tpu.memory_space<vmem>>, %arg18: memref<32x128xbf16, #tpu.memory_space<vmem>>, %arg19: memref<1x128xf32, #tpu.memory_space<vmem>>, %arg20: memref<16x128xf32, #tpu.memory_space<vmem>>, %arg21: memref<16x32xf32, #tpu.memory_space<vmem>>) attributes {dimension_semantics = [], scalar_prefetch = 0 : i64, scratch_operands = 1 : i64, tpu.core_type = #tpu.core_type<tc>} {
    %c0 = arith.constant 0 : index
    %c0_0 = arith.constant 0 : index
    %0 = vector.load %arg0[%c0, %c0_0] : memref<16x32xf32, #tpu.memory_space<vmem>>, vector<16x32xf32>
    %c0_1 = arith.constant 0 : index
    %c0_2 = arith.constant 0 : index
    %1 = vector.load %arg2[%c0_1, %c0_2] : memref<1x32xf32, #tpu.memory_space<vmem>>, vector<1x32xf32>
    %c0_3 = arith.constant 0 : index
    %c0_4 = arith.constant 0 : index
    %2 = vector.load %arg3[%c0_3, %c0_4] : memref<1x32xf32, #tpu.memory_space<vmem>>, vector<1x32xf32>
    %cst = arith.constant dense<0.000000e+00> : vector<16xf32>
    %3 = vector.multi_reduction <add>, %0, %cst [1] : vector<16x32xf32> to vector<16xf32>
    %4 = vector.shape_cast %3 : vector<16xf32> to vector<16x1xf32>
    %5 = arith.mulf %0, %0 : vector<16x32xf32>
    %cst_5 = arith.constant dense<0.000000e+00> : vector<16xf32>
    %6 = vector.multi_reduction <add>, %5, %cst_5 [1] : vector<16x32xf32> to vector<16xf32>
    %7 = vector.shape_cast %6 : vector<16xf32> to vector<16x1xf32>
    %cst_6 = arith.constant 3.125000e-02 : f32
    %8 = vector.broadcast %cst_6 : f32 to vector<16x1xf32>
    %9 = arith.mulf %4, %8 : vector<16x1xf32>
    %cst_7 = arith.constant 3.125000e-02 : f32
    %10 = vector.broadcast %cst_7 : f32 to vector<16x1xf32>
    %11 = arith.mulf %7, %10 : vector<16x1xf32>
    %12 = arith.mulf %9, %9 : vector<16x1xf32>
    %13 = arith.subf %11, %12 : vector<16x1xf32>
    %14 = vector.broadcast %9 : vector<16x1xf32> to vector<16x32xf32>
    %15 = arith.subf %0, %14 : vector<16x32xf32>
    %cst_8 = arith.constant 9.99999996E-13 : f32
    %16 = vector.broadcast %cst_8 : f32 to vector<16x1xf32>
    %17 = arith.addf %13, %16 : vector<16x1xf32>
    %18 = math.rsqrt %17 : vector<16x1xf32>
    %19 = vector.broadcast %18 : vector<16x1xf32> to vector<16x32xf32>
    %20 = arith.mulf %15, %19 : vector<16x32xf32>
    %21 = vector.broadcast %1 : vector<1x32xf32> to vector<16x32xf32>
    %22 = arith.mulf %20, %21 : vector<16x32xf32>
    %23 = vector.broadcast %2 : vector<1x32xf32> to vector<16x32xf32>
    %24 = arith.addf %22, %23 : vector<16x32xf32>
    %c0_9 = arith.constant 0 : index
    %c0_10 = arith.constant 0 : index
    %25 = vector.load %arg1[%c0_9, %c0_10] : memref<16x16xf32, #tpu.memory_space<vmem>>, vector<16x16xf32>
    %26 = arith.truncf %24 : vector<16x32xf32> to vector<16x32xbf16>
    %c0_11 = arith.constant 0 : index
    %c0_12 = arith.constant 0 : index
    %c0_13 = arith.constant 0 : index
    %27 = vector.load %arg4[%c0_11, %c0_12, %c0_13] : memref<2x32x96xbf16, #tpu.memory_space<vmem>>, vector<1x32x96xbf16>
    %28 = vector.shape_cast %27 : vector<1x32x96xbf16> to vector<32x96xbf16>
    %cst_14 = arith.constant dense<0.000000e+00> : vector<16x96xf32>
    %29 = tpu.matmul %26, %28, %cst_14 {dimension_numbers = #tpu.dot_dimension_numbers<[1], [0], [0], [1], [0, 0, 1, 1], [], []>} : vector<16x32xbf16>, vector<32x96xbf16>, vector<16x96xf32> -> vector<16x96xf32>
    %c0_15 = arith.constant 0 : index
    %c0_16 = arith.constant 0 : index
    %c0_17 = arith.constant 0 : index
    %30 = vector.load %arg5[%c0_15, %c0_16, %c0_17] : memref<2x1x96xf32, #tpu.memory_space<vmem>>, vector<1x1x96xf32>
    %31 = vector.shape_cast %30 : vector<1x1x96xf32> to vector<1x96xf32>
    %32 = vector.broadcast %31 : vector<1x96xf32> to vector<16x96xf32>
    %33 = arith.addf %29, %32 : vector<16x96xf32>
    %34 = vector.extract_strided_slice %33 {offsets = [0, 0], sizes = [16, 16], strides = [1, 1]} : vector<16x96xf32> to vector<16x16xf32>
    %35 = arith.truncf %34 : vector<16x16xf32> to vector<16x16xbf16>
    %36 = vector.extract_strided_slice %33 {offsets = [0, 32], sizes = [16, 16], strides = [1, 1]} : vector<16x96xf32> to vector<16x16xf32>
    %37 = arith.truncf %36 : vector<16x16xf32> to vector<16x16xbf16>
    %38 = vector.extract_strided_slice %33 {offsets = [0, 64], sizes = [16, 16], strides = [1, 1]} : vector<16x96xf32> to vector<16x16xf32>
    %39 = arith.truncf %38 : vector<16x16xf32> to vector<16x16xbf16>
    %cst_18 = arith.constant dense<0.000000e+00> : vector<16x16xf32>
    %40 = tpu.matmul %35, %37, %cst_18 {dimension_numbers = #tpu.dot_dimension_numbers<[1], [1], [0], [0], [0, 0, 1, 0], [], []>} : vector<16x16xbf16>, vector<16x16xbf16>, vector<16x16xf32> -> vector<16x16xf32>
    %cst_19 = arith.constant 2.500000e-01 : f32
    %41 = vector.broadcast %cst_19 : f32 to vector<16x16xf32>
    %42 = arith.mulf %40, %41 : vector<16x16xf32>
    %43 = arith.addf %42, %25 : vector<16x16xf32>
    %cst_20 = arith.constant dense<0xFF800000> : vector<16xf32>
    %44 = vector.multi_reduction <maximumf>, %43, %cst_20 [1] : vector<16x16xf32> to vector<16xf32>
    %45 = vector.shape_cast %44 : vector<16xf32> to vector<16x1xf32>
    %46 = vector.broadcast %45 : vector<16x1xf32> to vector<16x16xf32>
    %47 = arith.subf %43, %46 : vector<16x16xf32>
    %48 = math.exp %47 : vector<16x16xf32>
    %cst_21 = arith.constant dense<0.000000e+00> : vector<16xf32>
    %49 = vector.multi_reduction <add>, %48, %cst_21 [1] : vector<16x16xf32> to vector<16xf32>
    %50 = vector.shape_cast %49 : vector<16xf32> to vector<16x1xf32>
    %51 = tpu.reciprocal %50 {approx = true} : vector<16x1xf32> -> vector<16x1xf32>
    %52 = vector.broadcast %51 : vector<16x1xf32> to vector<16x16xf32>
    %53 = arith.mulf %48, %52 : vector<16x16xf32>
    %54 = arith.truncf %53 : vector<16x16xf32> to vector<16x16xbf16>
    %cst_22 = arith.constant dense<0.000000e+00> : vector<16x16xf32>
    %55 = tpu.matmul %54, %39, %cst_22 {dimension_numbers = #tpu.dot_dimension_numbers<[1], [0], [0], [1], [0, 0, 1, 1], [], []>} : vector<16x16xbf16>, vector<16x16xbf16>, vector<16x16xf32> -> vector<16x16xf32>
    %c0_23 = arith.constant 0 : index
    %c0_24 = arith.constant 0 : index
    %56 = vector.load %arg21[%c0_23, %c0_24] : memref<16x32xf32, #tpu.memory_space<vmem>>, vector<16x16xf32>
    tpu.vector_store %arg21[%c0_23, %c0_24], %55 {strides = array<i32>} : memref<16x32xf32, #tpu.memory_space<vmem>>, vector<16x16xf32>,
    %57 = vector.extract_strided_slice %33 {offsets = [0, 16], sizes = [16, 16], strides = [1, 1]} : vector<16x96xf32> to vector<16x16xf32>
    %58 = arith.truncf %57 : vector<16x16xf32> to vector<16x16xbf16>
    %59 = vector.extract_strided_slice %33 {offsets = [0, 48], sizes = [16, 16], strides = [1, 1]} : vector<16x96xf32> to vector<16x16xf32>
    %60 = arith.truncf %59 : vector<16x16xf32> to vector<16x16xbf16>
    %61 = vector.extract_strided_slice %33 {offsets = [0, 80], sizes = [16, 16], strides = [1, 1]} : vector<16x96xf32> to vector<16x16xf32>
    %62 = arith.truncf %61 : vector<16x16xf32> to vector<16x16xbf16>
    %cst_25 = arith.constant dense<0.000000e+00> : vector<16x16xf32>
    %63 = tpu.matmul %58, %60, %cst_25 {dimension_numbers = #tpu.dot_dimension_numbers<[1], [1], [0], [0], [0, 0, 1, 0], [], []>} : vector<16x16xbf16>, vector<16x16xbf16>, vector<16x16xf32> -> vector<16x16xf32>
    %cst_26 = arith.constant 2.500000e-01 : f32
    %64 = vector.broadcast %cst_26 : f32 to vector<16x16xf32>
    %65 = arith.mulf %63, %64 : vector<16x16xf32>
    %66 = arith.addf %65, %25 : vector<16x16xf32>
    %cst_27 = arith.constant dense<0xFF800000> : vector<16xf32>
    %67 = vector.multi_reduction <maximumf>, %66, %cst_27 [1] : vector<16x16xf32> to vector<16xf32>
    %68 = vector.shape_cast %67 : vector<16xf32> to vector<16x1xf32>
    %69 = vector.broadcast %68 : vector<16x1xf32> to vector<16x16xf32>
    %70 = arith.subf %66, %69 : vector<16x16xf32>
    %71 = math.exp %70 : vector<16x16xf32>
    %cst_28 = arith.constant dense<0.000000e+00> : vector<16xf32>
    %72 = vector.multi_reduction <add>, %71, %cst_28 [1] : vector<16x16xf32> to vector<16xf32>
    %73 = vector.shape_cast %72 : vector<16xf32> to vector<16x1xf32>
    %74 = tpu.reciprocal %73 {approx = true} : vector<16x1xf32> -> vector<16x1xf32>
    %75 = vector.broadcast %74 : vector<16x1xf32> to vector<16x16xf32>
    %76 = arith.mulf %71, %75 : vector<16x16xf32>
    %77 = arith.truncf %76 : vector<16x16xf32> to vector<16x16xbf16>
    %cst_29 = arith.constant dense<0.000000e+00> : vector<16x16xf32>
    %78 = tpu.matmul %77, %62, %cst_29 {dimension_numbers = #tpu.dot_dimension_numbers<[1], [0], [0], [1], [0, 0, 1, 1], [], []>} : vector<16x16xbf16>, vector<16x16xbf16>, vector<16x16xf32> -> vector<16x16xf32>
    %c0_30 = arith.constant 0 : index
    %c16 = arith.constant 16 : index
    %79 = vector.load %arg21[%c0_30, %c16] : memref<16x32xf32, #tpu.memory_space<vmem>>, vector<16x16xf32>
    tpu.vector_store %arg21[%c0_30, %c16], %78 {strides = array<i32>} : memref<16x32xf32, #tpu.memory_space<vmem>>, vector<16x16xf32>,
    %c0_31 = arith.constant 0 : index
    %c0_32 = arith.constant 0 : index
    %80 = vector.load %arg21[%c0_31, %c0_32] : memref<16x32xf32, #tpu.memory_space<vmem>>, vector<16x32xf32>
    %81 = arith.truncf %80 : vector<16x32xf32> to vector<16x32xbf16>
    %c0_33 = arith.constant 0 : index
    %c0_34 = arith.constant 0 : index
    %c0_35 = arith.constant 0 : index
    %82 = vector.load %arg6[%c0_33, %c0_34, %c0_35] : memref<2x32x32xbf16, #tpu.memory_space<vmem>>, vector<1x32x32xbf16>
    %83 = vector.shape_cast %82 : vector<1x32x32xbf16> to vector<32x32xbf16>
    %cst_36 = arith.constant dense<0.000000e+00> : vector<16x32xf32>
    %84 = tpu.matmul %81, %83, %cst_36 {dimension_numbers = #tpu.dot_dimension_numbers<[1], [0], [0], [1], [0, 0, 1, 1], [], []>} : vector<16x32xbf16>, vector<32x32xbf16>, vector<16x32xf32> -> vector<16x32xf32>
    %c0_37 = arith.constant 0 : index
    %c0_38 = arith.constant 0 : index
    %c0_39 = arith.constant 0 : index
    %85 = vector.load %arg7[%c0_37, %c0_38, %c0_39] : memref<2x1x32xf32, #tpu.memory_space<vmem>>, vector<1x1x32xf32>
    %86 = vector.shape_cast %85 : vector<1x1x32xf32> to vector<1x32xf32>
    %87 = vector.broadcast %86 : vector<1x32xf32> to vector<16x32xf32>
    %88 = arith.addf %84, %87 : vector<16x32xf32>
    %89 = arith.addf %24, %88 : vector<16x32xf32>
    %c0_40 = arith.constant 0 : index
    %c0_41 = arith.constant 0 : index
    %c0_42 = arith.constant 0 : index
    %90 = vector.load %arg8[%c0_40, %c0_41, %c0_42] : memref<2x1x32xf32, #tpu.memory_space<vmem>>, vector<1x1x32xf32>
    %91 = vector.shape_cast %90 : vector<1x1x32xf32> to vector<1x32xf32>
    %c0_43 = arith.constant 0 : index
    %c0_44 = arith.constant 0 : index
    %c0_45 = arith.constant 0 : index
    %92 = vector.load %arg9[%c0_43, %c0_44, %c0_45] : memref<2x1x32xf32, #tpu.memory_space<vmem>>, vector<1x1x32xf32>
    %93 = vector.shape_cast %92 : vector<1x1x32xf32> to vector<1x32xf32>
    %cst_46 = arith.constant dense<0.000000e+00> : vector<16xf32>
    %94 = vector.multi_reduction <add>, %89, %cst_46 [1] : vector<16x32xf32> to vector<16xf32>
    %95 = vector.shape_cast %94 : vector<16xf32> to vector<16x1xf32>
    %96 = arith.mulf %89, %89 : vector<16x32xf32>
    %cst_47 = arith.constant dense<0.000000e+00> : vector<16xf32>
    %97 = vector.multi_reduction <add>, %96, %cst_47 [1] : vector<16x32xf32> to vector<16xf32>
    %98 = vector.shape_cast %97 : vector<16xf32> to vector<16x1xf32>
    %cst_48 = arith.constant 3.125000e-02 : f32
    %99 = vector.broadcast %cst_48 : f32 to vector<16x1xf32>
    %100 = arith.mulf %95, %99 : vector<16x1xf32>
    %cst_49 = arith.constant 3.125000e-02 : f32
    %101 = vector.broadcast %cst_49 : f32 to vector<16x1xf32>
    %102 = arith.mulf %98, %101 : vector<16x1xf32>
    %103 = arith.mulf %100, %100 : vector<16x1xf32>
    %104 = arith.subf %102, %103 : vector<16x1xf32>
    %105 = vector.broadcast %100 : vector<16x1xf32> to vector<16x32xf32>
    %106 = arith.subf %89, %105 : vector<16x32xf32>
    %cst_50 = arith.constant 9.99999996E-13 : f32
    %107 = vector.broadcast %cst_50 : f32 to vector<16x1xf32>
    %108 = arith.addf %104, %107 : vector<16x1xf32>
    %109 = math.rsqrt %108 : vector<16x1xf32>
    %110 = vector.broadcast %109 : vector<16x1xf32> to vector<16x32xf32>
    %111 = arith.mulf %106, %110 : vector<16x32xf32>
    %112 = vector.broadcast %91 : vector<1x32xf32> to vector<16x32xf32>
    %113 = arith.mulf %111, %112 : vector<16x32xf32>
    %114 = vector.broadcast %93 : vector<1x32xf32> to vector<16x32xf32>
    %115 = arith.addf %113, %114 : vector<16x32xf32>
    %116 = arith.truncf %115 : vector<16x32xf32> to vector<16x32xbf16>
    %c0_51 = arith.constant 0 : index
    %c0_52 = arith.constant 0 : index
    %c0_53 = arith.constant 0 : index
    %117 = vector.load %arg10[%c0_51, %c0_52, %c0_53] : memref<2x32x64xbf16, #tpu.memory_space<vmem>>, vector<1x32x64xbf16>
    %118 = vector.shape_cast %117 : vector<1x32x64xbf16> to vector<32x64xbf16>
    %cst_54 = arith.constant dense<0.000000e+00> : vector<16x64xf32>
    %119 = tpu.matmul %116, %118, %cst_54 {dimension_numbers = #tpu.dot_dimension_numbers<[1], [0], [0], [1], [0, 0, 1, 1], [], []>} : vector<16x32xbf16>, vector<32x64xbf16>, vector<16x64xf32> -> vector<16x64xf32>
    %c0_55 = arith.constant 0 : index
    %c0_56 = arith.constant 0 : index
    %c0_57 = arith.constant 0 : index
    %120 = vector.load %arg11[%c0_55, %c0_56, %c0_57] : memref<2x1x64xf32, #tpu.memory_space<vmem>>, vector<1x1x64xf32>
    %121 = vector.shape_cast %120 : vector<1x1x64xf32> to vector<1x64xf32>
    %122 = vector.broadcast %121 : vector<1x64xf32> to vector<16x64xf32>
    %123 = arith.addf %119, %122 : vector<16x64xf32>
    %cst_58 = arith.constant 5.000000e-01 : f32
    %124 = vector.broadcast %cst_58 : f32 to vector<16x64xf32>
    %125 = arith.mulf %124, %123 : vector<16x64xf32>
    %cst_59 = arith.constant 4.471500e-02 : f32
    %126 = vector.broadcast %cst_59 : f32 to vector<16x64xf32>
    %127 = arith.mulf %126, %123 : vector<16x64xf32>
    %128 = arith.mulf %127, %123 : vector<16x64xf32>
    %129 = arith.mulf %128, %123 : vector<16x64xf32>
    %130 = arith.addf %123, %129 : vector<16x64xf32>
    %cst_60 = arith.constant 0.797884583 : f32
    %131 = vector.broadcast %cst_60 : f32 to vector<16x64xf32>
    %132 = arith.mulf %131, %130 : vector<16x64xf32>
    %133 = math.tanh %132 : vector<16x64xf32>
    %cst_61 = arith.constant 1.000000e+00 : f32
    %134 = vector.broadcast %cst_61 : f32 to vector<16x64xf32>
    %135 = arith.addf %134, %133 : vector<16x64xf32>
    %136 = arith.mulf %125, %135 : vector<16x64xf32>
    %137 = arith.truncf %136 : vector<16x64xf32> to vector<16x64xbf16>
    %c0_62 = arith.constant 0 : index
    %c0_63 = arith.constant 0 : index
    %c0_64 = arith.constant 0 : index
    %138 = vector.load %arg12[%c0_62, %c0_63, %c0_64] : memref<2x64x32xbf16, #tpu.memory_space<vmem>>, vector<1x64x32xbf16>
    %139 = vector.shape_cast %138 : vector<1x64x32xbf16> to vector<64x32xbf16>
    %cst_65 = arith.constant dense<0.000000e+00> : vector<16x32xf32>
    %140 = tpu.matmul %137, %139, %cst_65 {dimension_numbers = #tpu.dot_dimension_numbers<[1], [0], [0], [1], [0, 0, 1, 1], [], []>} : vector<16x64xbf16>, vector<64x32xbf16>, vector<16x32xf32> -> vector<16x32xf32>
    %c0_66 = arith.constant 0 : index
    %c0_67 = arith.constant 0 : index
    %c0_68 = arith.constant 0 : index
    %141 = vector.load %arg13[%c0_66, %c0_67, %c0_68] : memref<2x1x32xf32, #tpu.memory_space<vmem>>, vector<1x1x32xf32>
    %142 = vector.shape_cast %141 : vector<1x1x32xf32> to vector<1x32xf32>
    %143 = vector.broadcast %142 : vector<1x32xf32> to vector<16x32xf32>
    %144 = arith.addf %140, %143 : vector<16x32xf32>
    %145 = arith.addf %115, %144 : vector<16x32xf32>
    %c0_69 = arith.constant 0 : index
    %c0_70 = arith.constant 0 : index
    %c0_71 = arith.constant 0 : index
    %146 = vector.load %arg14[%c0_69, %c0_70, %c0_71] : memref<2x1x32xf32, #tpu.memory_space<vmem>>, vector<1x1x32xf32>
    %147 = vector.shape_cast %146 : vector<1x1x32xf32> to vector<1x32xf32>
    %c0_72 = arith.constant 0 : index
    %c0_73 = arith.constant 0 : index
    %c0_74 = arith.constant 0 : index
    %148 = vector.load %arg15[%c0_72, %c0_73, %c0_74] : memref<2x1x32xf32, #tpu.memory_space<vmem>>, vector<1x1x32xf32>
    %149 = vector.shape_cast %148 : vector<1x1x32xf32> to vector<1x32xf32>
    %cst_75 = arith.constant dense<0.000000e+00> : vector<16xf32>
    %150 = vector.multi_reduction <add>, %145, %cst_75 [1] : vector<16x32xf32> to vector<16xf32>
    %151 = vector.shape_cast %150 : vector<16xf32> to vector<16x1xf32>
    %152 = arith.mulf %145, %145 : vector<16x32xf32>
    %cst_76 = arith.constant dense<0.000000e+00> : vector<16xf32>
    %153 = vector.multi_reduction <add>, %152, %cst_76 [1] : vector<16x32xf32> to vector<16xf32>
    %154 = vector.shape_cast %153 : vector<16xf32> to vector<16x1xf32>
    %cst_77 = arith.constant 3.125000e-02 : f32
    %155 = vector.broadcast %cst_77 : f32 to vector<16x1xf32>
    %156 = arith.mulf %151, %155 : vector<16x1xf32>
    %cst_78 = arith.constant 3.125000e-02 : f32
    %157 = vector.broadcast %cst_78 : f32 to vector<16x1xf32>
    %158 = arith.mulf %154, %157 : vector<16x1xf32>
    %159 = arith.mulf %156, %156 : vector<16x1xf32>
    %160 = arith.subf %158, %159 : vector<16x1xf32>
    %161 = vector.broadcast %156 : vector<16x1xf32> to vector<16x32xf32>
    %162 = arith.subf %145, %161 : vector<16x32xf32>
    %cst_79 = arith.constant 9.99999996E-13 : f32
    %163 = vector.broadcast %cst_79 : f32 to vector<16x1xf32>
    %164 = arith.addf %160, %163 : vector<16x1xf32>
    %165 = math.rsqrt %164 : vector<16x1xf32>
    %166 = vector.broadcast %165 : vector<16x1xf32> to vector<16x32xf32>
    %167 = arith.mulf %162, %166 : vector<16x32xf32>
    %168 = vector.broadcast %147 : vector<1x32xf32> to vector<16x32xf32>
    %169 = arith.mulf %167, %168 : vector<16x32xf32>
    %170 = vector.broadcast %149 : vector<1x32xf32> to vector<16x32xf32>
    %171 = arith.addf %169, %170 : vector<16x32xf32>
    %172 = arith.truncf %171 : vector<16x32xf32> to vector<16x32xbf16>
    %c1 = arith.constant 1 : index
    %c0_80 = arith.constant 0 : index
    %c0_81 = arith.constant 0 : index
    %173 = vector.load %arg4[%c1, %c0_80, %c0_81] : memref<2x32x96xbf16, #tpu.memory_space<vmem>>, vector<1x32x96xbf16>
    %174 = vector.shape_cast %173 : vector<1x32x96xbf16> to vector<32x96xbf16>
    %cst_82 = arith.constant dense<0.000000e+00> : vector<16x96xf32>
    %175 = tpu.matmul %172, %174, %cst_82 {dimension_numbers = #tpu.dot_dimension_numbers<[1], [0], [0], [1], [0, 0, 1, 1], [], []>} : vector<16x32xbf16>, vector<32x96xbf16>, vector<16x96xf32> -> vector<16x96xf32>
    %c1_83 = arith.constant 1 : index
    %c0_84 = arith.constant 0 : index
    %c0_85 = arith.constant 0 : index
    %176 = vector.load %arg5[%c1_83, %c0_84, %c0_85] : memref<2x1x96xf32, #tpu.memory_space<vmem>>, vector<1x1x96xf32>
    %177 = vector.shape_cast %176 : vector<1x1x96xf32> to vector<1x96xf32>
    %178 = vector.broadcast %177 : vector<1x96xf32> to vector<16x96xf32>
    %179 = arith.addf %175, %178 : vector<16x96xf32>
    %180 = vector.extract_strided_slice %179 {offsets = [0, 0], sizes = [16, 16], strides = [1, 1]} : vector<16x96xf32> to vector<16x16xf32>
    %181 = arith.truncf %180 : vector<16x16xf32> to vector<16x16xbf16>
    %182 = vector.extract_strided_slice %179 {offsets = [0, 32], sizes = [16, 16], strides = [1, 1]} : vector<16x96xf32> to vector<16x16xf32>
    %183 = arith.truncf %182 : vector<16x16xf32> to vector<16x16xbf16>
    %184 = vector.extract_strided_slice %179 {offsets = [0, 64], sizes = [16, 16], strides = [1, 1]} : vector<16x96xf32> to vector<16x16xf32>
    %185 = arith.truncf %184 : vector<16x16xf32> to vector<16x16xbf16>
    %cst_86 = arith.constant dense<0.000000e+00> : vector<16x16xf32>
    %186 = tpu.matmul %181, %183, %cst_86 {dimension_numbers = #tpu.dot_dimension_numbers<[1], [1], [0], [0], [0, 0, 1, 0], [], []>} : vector<16x16xbf16>, vector<16x16xbf16>, vector<16x16xf32> -> vector<16x16xf32>
    %cst_87 = arith.constant 2.500000e-01 : f32
    %187 = vector.broadcast %cst_87 : f32 to vector<16x16xf32>
    %188 = arith.mulf %186, %187 : vector<16x16xf32>
    %189 = arith.addf %188, %25 : vector<16x16xf32>
    %cst_88 = arith.constant dense<0xFF800000> : vector<16xf32>
    %190 = vector.multi_reduction <maximumf>, %189, %cst_88 [1] : vector<16x16xf32> to vector<16xf32>
    %191 = vector.shape_cast %190 : vector<16xf32> to vector<16x1xf32>
    %192 = vector.broadcast %191 : vector<16x1xf32> to vector<16x16xf32>
    %193 = arith.subf %189, %192 : vector<16x16xf32>
    %194 = math.exp %193 : vector<16x16xf32>
    %cst_89 = arith.constant dense<0.000000e+00> : vector<16xf32>
    %195 = vector.multi_reduction <add>, %194, %cst_89 [1] : vector<16x16xf32> to vector<16xf32>
    %196 = vector.shape_cast %195 : vector<16xf32> to vector<16x1xf32>
    %197 = tpu.reciprocal %196 {approx = true} : vector<16x1xf32> -> vector<16x1xf32>
    %198 = vector.broadcast %197 : vector<16x1xf32> to vector<16x16xf32>
    %199 = arith.mulf %194, %198 : vector<16x16xf32>
    %200 = arith.truncf %199 : vector<16x16xf32> to vector<16x16xbf16>
    %cst_90 = arith.constant dense<0.000000e+00> : vector<16x16xf32>
    %201 = tpu.matmul %200, %185, %cst_90 {dimension_numbers = #tpu.dot_dimension_numbers<[1], [0], [0], [1], [0, 0, 1, 1], [], []>} : vector<16x16xbf16>, vector<16x16xbf16>, vector<16x16xf32> -> vector<16x16xf32>
    %c0_91 = arith.constant 0 : index
    %c0_92 = arith.constant 0 : index
    %202 = vector.load %arg21[%c0_91, %c0_92] : memref<16x32xf32, #tpu.memory_space<vmem>>, vector<16x16xf32>
    tpu.vector_store %arg21[%c0_91, %c0_92], %201 {strides = array<i32>} : memref<16x32xf32, #tpu.memory_space<vmem>>, vector<16x16xf32>,
    %203 = vector.extract_strided_slice %179 {offsets = [0, 16], sizes = [16, 16], strides = [1, 1]} : vector<16x96xf32> to vector<16x16xf32>
    %204 = arith.truncf %203 : vector<16x16xf32> to vector<16x16xbf16>
    %205 = vector.extract_strided_slice %179 {offsets = [0, 48], sizes = [16, 16], strides = [1, 1]} : vector<16x96xf32> to vector<16x16xf32>
    %206 = arith.truncf %205 : vector<16x16xf32> to vector<16x16xbf16>
    %207 = vector.extract_strided_slice %179 {offsets = [0, 80], sizes = [16, 16], strides = [1, 1]} : vector<16x96xf32> to vector<16x16xf32>
    %208 = arith.truncf %207 : vector<16x16xf32> to vector<16x16xbf16>
    %cst_93 = arith.constant dense<0.000000e+00> : vector<16x16xf32>
    %209 = tpu.matmul %204, %206, %cst_93 {dimension_numbers = #tpu.dot_dimension_numbers<[1], [1], [0], [0], [0, 0, 1, 0], [], []>} : vector<16x16xbf16>, vector<16x16xbf16>, vector<16x16xf32> -> vector<16x16xf32>
    %cst_94 = arith.constant 2.500000e-01 : f32
    %210 = vector.broadcast %cst_94 : f32 to vector<16x16xf32>
    %211 = arith.mulf %209, %210 : vector<16x16xf32>
    %212 = arith.addf %211, %25 : vector<16x16xf32>
    %cst_95 = arith.constant dense<0xFF800000> : vector<16xf32>
    %213 = vector.multi_reduction <maximumf>, %212, %cst_95 [1] : vector<16x16xf32> to vector<16xf32>
    %214 = vector.shape_cast %213 : vector<16xf32> to vector<16x1xf32>
    %215 = vector.broadcast %214 : vector<16x1xf32> to vector<16x16xf32>
    %216 = arith.subf %212, %215 : vector<16x16xf32>
    %217 = math.exp %216 : vector<16x16xf32>
    %cst_96 = arith.constant dense<0.000000e+00> : vector<16xf32>
    %218 = vector.multi_reduction <add>, %217, %cst_96 [1] : vector<16x16xf32> to vector<16xf32>
    %219 = vector.shape_cast %218 : vector<16xf32> to vector<16x1xf32>
    %220 = tpu.reciprocal %219 {approx = true} : vector<16x1xf32> -> vector<16x1xf32>
    %221 = vector.broadcast %220 : vector<16x1xf32> to vector<16x16xf32>
    %222 = arith.mulf %217, %221 : vector<16x16xf32>
    %223 = arith.truncf %222 : vector<16x16xf32> to vector<16x16xbf16>
    %cst_97 = arith.constant dense<0.000000e+00> : vector<16x16xf32>
    %224 = tpu.matmul %223, %208, %cst_97 {dimension_numbers = #tpu.dot_dimension_numbers<[1], [0], [0], [1], [0, 0, 1, 1], [], []>} : vector<16x16xbf16>, vector<16x16xbf16>, vector<16x16xf32> -> vector<16x16xf32>
    %c0_98 = arith.constant 0 : index
    %c16_99 = arith.constant 16 : index
    %225 = vector.load %arg21[%c0_98, %c16_99] : memref<16x32xf32, #tpu.memory_space<vmem>>, vector<16x16xf32>
    tpu.vector_store %arg21[%c0_98, %c16_99], %224 {strides = array<i32>} : memref<16x32xf32, #tpu.memory_space<vmem>>, vector<16x16xf32>,
    %c0_100 = arith.constant 0 : index
    %c0_101 = arith.constant 0 : index
    %226 = vector.load %arg21[%c0_100, %c0_101] : memref<16x32xf32, #tpu.memory_space<vmem>>, vector<16x32xf32>
    %227 = arith.truncf %226 : vector<16x32xf32> to vector<16x32xbf16>
    %c1_102 = arith.constant 1 : index
    %c0_103 = arith.constant 0 : index
    %c0_104 = arith.constant 0 : index
    %228 = vector.load %arg6[%c1_102, %c0_103, %c0_104] : memref<2x32x32xbf16, #tpu.memory_space<vmem>>, vector<1x32x32xbf16>
    %229 = vector.shape_cast %228 : vector<1x32x32xbf16> to vector<32x32xbf16>
    %cst_105 = arith.constant dense<0.000000e+00> : vector<16x32xf32>
    %230 = tpu.matmul %227, %229, %cst_105 {dimension_numbers = #tpu.dot_dimension_numbers<[1], [0], [0], [1], [0, 0, 1, 1], [], []>} : vector<16x32xbf16>, vector<32x32xbf16>, vector<16x32xf32> -> vector<16x32xf32>
    %c1_106 = arith.constant 1 : index
    %c0_107 = arith.constant 0 : index
    %c0_108 = arith.constant 0 : index
    %231 = vector.load %arg7[%c1_106, %c0_107, %c0_108] : memref<2x1x32xf32, #tpu.memory_space<vmem>>, vector<1x1x32xf32>
    %232 = vector.shape_cast %231 : vector<1x1x32xf32> to vector<1x32xf32>
    %233 = vector.broadcast %232 : vector<1x32xf32> to vector<16x32xf32>
    %234 = arith.addf %230, %233 : vector<16x32xf32>
    %235 = arith.addf %171, %234 : vector<16x32xf32>
    %c1_109 = arith.constant 1 : index
    %c0_110 = arith.constant 0 : index
    %c0_111 = arith.constant 0 : index
    %236 = vector.load %arg8[%c1_109, %c0_110, %c0_111] : memref<2x1x32xf32, #tpu.memory_space<vmem>>, vector<1x1x32xf32>
    %237 = vector.shape_cast %236 : vector<1x1x32xf32> to vector<1x32xf32>
    %c1_112 = arith.constant 1 : index
    %c0_113 = arith.constant 0 : index
    %c0_114 = arith.constant 0 : index
    %238 = vector.load %arg9[%c1_112, %c0_113, %c0_114] : memref<2x1x32xf32, #tpu.memory_space<vmem>>, vector<1x1x32xf32>
    %239 = vector.shape_cast %238 : vector<1x1x32xf32> to vector<1x32xf32>
    %cst_115 = arith.constant dense<0.000000e+00> : vector<16xf32>
    %240 = vector.multi_reduction <add>, %235, %cst_115 [1] : vector<16x32xf32> to vector<16xf32>
    %241 = vector.shape_cast %240 : vector<16xf32> to vector<16x1xf32>
    %242 = arith.mulf %235, %235 : vector<16x32xf32>
    %cst_116 = arith.constant dense<0.000000e+00> : vector<16xf32>
    %243 = vector.multi_reduction <add>, %242, %cst_116 [1] : vector<16x32xf32> to vector<16xf32>
    %244 = vector.shape_cast %243 : vector<16xf32> to vector<16x1xf32>
    %cst_117 = arith.constant 3.125000e-02 : f32
    %245 = vector.broadcast %cst_117 : f32 to vector<16x1xf32>
    %246 = arith.mulf %241, %245 : vector<16x1xf32>
    %cst_118 = arith.constant 3.125000e-02 : f32
    %247 = vector.broadcast %cst_118 : f32 to vector<16x1xf32>
    %248 = arith.mulf %244, %247 : vector<16x1xf32>
    %249 = arith.mulf %246, %246 : vector<16x1xf32>
    %250 = arith.subf %248, %249 : vector<16x1xf32>
    %251 = vector.broadcast %246 : vector<16x1xf32> to vector<16x32xf32>
    %252 = arith.subf %235, %251 : vector<16x32xf32>
    %cst_119 = arith.constant 9.99999996E-13 : f32
    %253 = vector.broadcast %cst_119 : f32 to vector<16x1xf32>
    %254 = arith.addf %250, %253 : vector<16x1xf32>
    %255 = math.rsqrt %254 : vector<16x1xf32>
    %256 = vector.broadcast %255 : vector<16x1xf32> to vector<16x32xf32>
    %257 = arith.mulf %252, %256 : vector<16x32xf32>
    %258 = vector.broadcast %237 : vector<1x32xf32> to vector<16x32xf32>
    %259 = arith.mulf %257, %258 : vector<16x32xf32>
    %260 = vector.broadcast %239 : vector<1x32xf32> to vector<16x32xf32>
    %261 = arith.addf %259, %260 : vector<16x32xf32>
    %262 = arith.truncf %261 : vector<16x32xf32> to vector<16x32xbf16>
    %c1_120 = arith.constant 1 : index
    %c0_121 = arith.constant 0 : index
    %c0_122 = arith.constant 0 : index
    %263 = vector.load %arg10[%c1_120, %c0_121, %c0_122] : memref<2x32x64xbf16, #tpu.memory_space<vmem>>, vector<1x32x64xbf16>
    %264 = vector.shape_cast %263 : vector<1x32x64xbf16> to vector<32x64xbf16>
    %cst_123 = arith.constant dense<0.000000e+00> : vector<16x64xf32>
    %265 = tpu.matmul %262, %264, %cst_123 {dimension_numbers = #tpu.dot_dimension_numbers<[1], [0], [0], [1], [0, 0, 1, 1], [], []>} : vector<16x32xbf16>, vector<32x64xbf16>, vector<16x64xf32> -> vector<16x64xf32>
    %c1_124 = arith.constant 1 : index
    %c0_125 = arith.constant 0 : index
    %c0_126 = arith.constant 0 : index
    %266 = vector.load %arg11[%c1_124, %c0_125, %c0_126] : memref<2x1x64xf32, #tpu.memory_space<vmem>>, vector<1x1x64xf32>
    %267 = vector.shape_cast %266 : vector<1x1x64xf32> to vector<1x64xf32>
    %268 = vector.broadcast %267 : vector<1x64xf32> to vector<16x64xf32>
    %269 = arith.addf %265, %268 : vector<16x64xf32>
    %cst_127 = arith.constant 5.000000e-01 : f32
    %270 = vector.broadcast %cst_127 : f32 to vector<16x64xf32>
    %271 = arith.mulf %270, %269 : vector<16x64xf32>
    %cst_128 = arith.constant 4.471500e-02 : f32
    %272 = vector.broadcast %cst_128 : f32 to vector<16x64xf32>
    %273 = arith.mulf %272, %269 : vector<16x64xf32>
    %274 = arith.mulf %273, %269 : vector<16x64xf32>
    %275 = arith.mulf %274, %269 : vector<16x64xf32>
    %276 = arith.addf %269, %275 : vector<16x64xf32>
    %cst_129 = arith.constant 0.797884583 : f32
    %277 = vector.broadcast %cst_129 : f32 to vector<16x64xf32>
    %278 = arith.mulf %277, %276 : vector<16x64xf32>
    %279 = math.tanh %278 : vector<16x64xf32>
    %cst_130 = arith.constant 1.000000e+00 : f32
    %280 = vector.broadcast %cst_130 : f32 to vector<16x64xf32>
    %281 = arith.addf %280, %279 : vector<16x64xf32>
    %282 = arith.mulf %271, %281 : vector<16x64xf32>
    %283 = arith.truncf %282 : vector<16x64xf32> to vector<16x64xbf16>
    %c1_131 = arith.constant 1 : index
    %c0_132 = arith.constant 0 : index
    %c0_133 = arith.constant 0 : index
    %284 = vector.load %arg12[%c1_131, %c0_132, %c0_133] : memref<2x64x32xbf16, #tpu.memory_space<vmem>>, vector<1x64x32xbf16>
    %285 = vector.shape_cast %284 : vector<1x64x32xbf16> to vector<64x32xbf16>
    %cst_134 = arith.constant dense<0.000000e+00> : vector<16x32xf32>
    %286 = tpu.matmul %283, %285, %cst_134 {dimension_numbers = #tpu.dot_dimension_numbers<[1], [0], [0], [1], [0, 0, 1, 1], [], []>} : vector<16x64xbf16>, vector<64x32xbf16>, vector<16x32xf32> -> vector<16x32xf32>
    %c1_135 = arith.constant 1 : index
    %c0_136 = arith.constant 0 : index
    %c0_137 = arith.constant 0 : index
    %287 = vector.load %arg13[%c1_135, %c0_136, %c0_137] : memref<2x1x32xf32, #tpu.memory_space<vmem>>, vector<1x1x32xf32>
    %288 = vector.shape_cast %287 : vector<1x1x32xf32> to vector<1x32xf32>
    %289 = vector.broadcast %288 : vector<1x32xf32> to vector<16x32xf32>
    %290 = arith.addf %286, %289 : vector<16x32xf32>
    %291 = arith.addf %261, %290 : vector<16x32xf32>
    %c1_138 = arith.constant 1 : index
    %c0_139 = arith.constant 0 : index
    %c0_140 = arith.constant 0 : index
    %292 = vector.load %arg14[%c1_138, %c0_139, %c0_140] : memref<2x1x32xf32, #tpu.memory_space<vmem>>, vector<1x1x32xf32>
    %293 = vector.shape_cast %292 : vector<1x1x32xf32> to vector<1x32xf32>
    %c1_141 = arith.constant 1 : index
    %c0_142 = arith.constant 0 : index
    %c0_143 = arith.constant 0 : index
    %294 = vector.load %arg15[%c1_141, %c0_142, %c0_143] : memref<2x1x32xf32, #tpu.memory_space<vmem>>, vector<1x1x32xf32>
    %295 = vector.shape_cast %294 : vector<1x1x32xf32> to vector<1x32xf32>
    %cst_144 = arith.constant dense<0.000000e+00> : vector<16xf32>
    %296 = vector.multi_reduction <add>, %291, %cst_144 [1] : vector<16x32xf32> to vector<16xf32>
    %297 = vector.shape_cast %296 : vector<16xf32> to vector<16x1xf32>
    %298 = arith.mulf %291, %291 : vector<16x32xf32>
    %cst_145 = arith.constant dense<0.000000e+00> : vector<16xf32>
    %299 = vector.multi_reduction <add>, %298, %cst_145 [1] : vector<16x32xf32> to vector<16xf32>
    %300 = vector.shape_cast %299 : vector<16xf32> to vector<16x1xf32>
    %cst_146 = arith.constant 3.125000e-02 : f32
    %301 = vector.broadcast %cst_146 : f32 to vector<16x1xf32>
    %302 = arith.mulf %297, %301 : vector<16x1xf32>
    %cst_147 = arith.constant 3.125000e-02 : f32
    %303 = vector.broadcast %cst_147 : f32 to vector<16x1xf32>
    %304 = arith.mulf %300, %303 : vector<16x1xf32>
    %305 = arith.mulf %302, %302 : vector<16x1xf32>
    %306 = arith.subf %304, %305 : vector<16x1xf32>
    %307 = vector.broadcast %302 : vector<16x1xf32> to vector<16x32xf32>
    %308 = arith.subf %291, %307 : vector<16x32xf32>
    %cst_148 = arith.constant 9.99999996E-13 : f32
    %309 = vector.broadcast %cst_148 : f32 to vector<16x1xf32>
    %310 = arith.addf %306, %309 : vector<16x1xf32>
    %311 = math.rsqrt %310 : vector<16x1xf32>
    %312 = vector.broadcast %311 : vector<16x1xf32> to vector<16x32xf32>
    %313 = arith.mulf %308, %312 : vector<16x32xf32>
    %314 = vector.broadcast %293 : vector<1x32xf32> to vector<16x32xf32>
    %315 = arith.mulf %313, %314 : vector<16x32xf32>
    %316 = vector.broadcast %295 : vector<1x32xf32> to vector<16x32xf32>
    %317 = arith.addf %315, %316 : vector<16x32xf32>
    %318 = arith.truncf %317 : vector<16x32xf32> to vector<16x32xbf16>
    %c0_149 = arith.constant 0 : index
    %c0_150 = arith.constant 0 : index
    %319 = vector.load %arg16[%c0_149, %c0_150] : memref<32x32xbf16, #tpu.memory_space<vmem>>, vector<32x32xbf16>
    %cst_151 = arith.constant dense<0.000000e+00> : vector<16x32xf32>
    %320 = tpu.matmul %318, %319, %cst_151 {dimension_numbers = #tpu.dot_dimension_numbers<[1], [0], [0], [1], [0, 0, 1, 1], [], []>} : vector<16x32xbf16>, vector<32x32xbf16>, vector<16x32xf32> -> vector<16x32xf32>
    %c0_152 = arith.constant 0 : index
    %c0_153 = arith.constant 0 : index
    %321 = vector.load %arg17[%c0_152, %c0_153] : memref<1x32xf32, #tpu.memory_space<vmem>>, vector<1x32xf32>
    %322 = vector.broadcast %321 : vector<1x32xf32> to vector<16x32xf32>
    %323 = arith.addf %320, %322 : vector<16x32xf32>
    %324 = math.tanh %323 : vector<16x32xf32>
    %325 = arith.truncf %324 : vector<16x32xf32> to vector<16x32xbf16>
    %c0_154 = arith.constant 0 : index
    %c0_155 = arith.constant 0 : index
    %326 = vector.load %arg18[%c0_154, %c0_155] : memref<32x128xbf16, #tpu.memory_space<vmem>>, vector<32x128xbf16>
    %cst_156 = arith.constant dense<0.000000e+00> : vector<16x128xf32>
    %327 = tpu.matmul %325, %326, %cst_156 {dimension_numbers = #tpu.dot_dimension_numbers<[1], [0], [0], [1], [0, 0, 1, 1], [], []>} : vector<16x32xbf16>, vector<32x128xbf16>, vector<16x128xf32> -> vector<16x128xf32>
    %c0_157 = arith.constant 0 : index
    %c0_158 = arith.constant 0 : index
    %328 = vector.load %arg19[%c0_157, %c0_158] : memref<1x128xf32, #tpu.memory_space<vmem>>, vector<1x128xf32>
    %329 = vector.broadcast %328 : vector<1x128xf32> to vector<16x128xf32>
    %330 = arith.addf %327, %329 : vector<16x128xf32>
    %cst_159 = arith.constant 5.000000e-01 : f32
    %331 = vector.broadcast %cst_159 : f32 to vector<16x128xf32>
    %332 = arith.mulf %331, %330 : vector<16x128xf32>
    %333 = math.tanh %332 : vector<16x128xf32>
    %cst_160 = arith.constant 1.000000e+00 : f32
    %334 = vector.broadcast %cst_160 : f32 to vector<16x128xf32>
    %335 = arith.addf %333, %334 : vector<16x128xf32>
    %cst_161 = arith.constant 5.000000e-01 : f32
    %336 = vector.broadcast %cst_161 : f32 to vector<16x128xf32>
    %337 = arith.mulf %336, %335 : vector<16x128xf32>
    %c0_162 = arith.constant 0 : index
    %c0_163 = arith.constant 0 : index
    %338 = vector.load %arg20[%c0_162, %c0_163] : memref<16x128xf32, #tpu.memory_space<vmem>>, vector<16x128xf32>
    tpu.vector_store %arg20[%c0_162, %c0_163], %337 {strides = array<i32>} : memref<16x128xf32, #tpu.memory_space<vmem>>, vector<16x128xf32>,
    return
  }
}

</mosaic_0001>

<bundles_post_ra>
// kernel: bert_similarity_forward.1
= control target key start
LH: loop header
LB: loop body
LE: loop exit
PB: predicated region body
PF: predicated region fallthrough
CT: control target
= control target key end

     0   :  { %vm70_vm0 = vcmask 261120   ;;  %v2002_v8 = vmov 0.0   ;;  %vm2003_vm1 = vmmov 0   ;;  %s2005_s25 = smov 96   ;;  %vm191_vm2 = vcmask 130048   ;;  %s2457_s0 = inlined_call_operand.vmem [shape: f32[16,32], index: 0, kind: input, shape index: {}]   ;;  %s2458_s4 = inlined_call_operand.vmem [shape: bf16[2,32,96], index: 4, kind: input, shape index: {}]   ;;  %s2459_s2 = inlined_call_operand.vmem [shape: f32[1,32], index: 2, kind: input, shape index: {}]   ;;  %s2460_s3 = inlined_call_operand.vmem [shape: f32[1,32], index: 3, kind: input, shape index: {}]   ;;  %s2461_s5 = inlined_call_operand.vmem [shape: f32[2,1,96], index: 5, kind: input, shape index: {}]   ;;  %s2462_s1 = inlined_call_operand.vmem [shape: f32[16,16], index: 1, kind: input, shape index: {}]   ;;  %s2463_s6 = inlined_call_operand.vmem [shape: bf16[2,32,32], index: 6, kind: input, shape index: {}]   ;;  %s2464_s7 = inlined_call_operand.vmem [shape: f32[2,1,32], index: 7, kind: input, shape index: {}]   ;;  %s2465_s10 = inlined_call_operand.vmem [shape: bf16[2,32,64], index: 10, kind: input, shape index: {}]   ;;  %s2466_s8 = inlined_call_operand.vmem [shape: f32[2,1,32], index: 8, kind: input, shape index: {}]   ;;  %s2467_s9 = inlined_call_operand.vmem [shape: f32[2,1,32], index: 9, kind: input, shape index: {}]   ;;  %s2468_s12 = inlined_call_operand.vmem [shape: bf16[2,64,32], index: 12, kind: input, shape index: {}]   ;;  %s2469_s11 = inlined_call_operand.vmem [shape: f32[2,1,64], index: 11, kind: input, shape index: {}]   ;;  %s2470_s13 = inlined_call_operand.vmem [shape: f32[2,1,32], index: 13, kind: input, shape index: {}]   ;;  %s2471_s14 = inlined_call_operand.vmem [shape: f32[2,1,32], index: 14, kind: input, shape index: {}]   ;;  %s2472_s15 = inlined_call_operand.vmem [shape: f32[2,1,32], index: 15, kind: input, shape index: {}]   ;;  %s2473_s16 = inlined_call_operand.vmem [shape: bf16[32,32], index: 16, kind: input, shape index: {}]   ;;  %s2474_s18 = inlined_call_operand.vmem [shape: bf16[32,128], index: 18, kind: input, shape index: {}]   ;;  %s2475_s17 = inlined_call_operand.vmem [shape: f32[1,32], index: 17, kind: input, shape index: {}]   ;;  %s2476_s19 = inlined_call_operand.vmem [shape: f32[1,128], index: 19, kind: input, shape index: {}]   ;;  %s2477_s20 = inlined_call_operand.vmem [shape: f32[16,128], index: 20, kind: output, shape index: {}]  }
   0x1   :  { %2481 = sst [smem:[#allocation3_spill]] %s2457_s0  ;;  %1766 = vmatprep.subr.bf16.mxu0 %v2002_v8  ;;  %1770 = vmatprep.mubr.msk.bf16.mxu0 %vm2003_vm1, %v2002_v8  ;;  %v2179_v52 = vld [vmem:[%s2462_s1] sm:$0xff]  ;;  %v2184_v56 = vld [vmem:[%s2462_s1 + $0x8] sm:$0xff]  ;;  %s2007_s1 = smov 64   ;;  %vm448_vm3 = vcmask 261248   ;;  %vm697_vm4 = vcmask 523264  }
   0x2   :  { %2482 = sst [smem:[#allocation4_spill]] %s2458_s4  ;;  %s2486_s23 = sld [smem:[#allocation3_spill]]  ;;  %1774 = vmatprep.subr.bf16.mxu1 %v2002_v8  ;;  %1776 = vmatprep.mubr.msk.bf16.mxu1 %vm2003_vm1, %v2002_v8 }
   0x3   :  { %2483 = sst [smem:[#allocation5_spill]] %s2459_s2  ;;  %s2487_s26 = sld [smem:[#allocation4_spill]] }
   0x4   :  { %2484 = sst [smem:[#allocation6_spill]] %s2460_s3  ;;  %s2488_s30 = sld [smem:[#allocation5_spill]] }
   0x5   :  { %2485 = sst [smem:[#allocation7_spill]] %s2461_s5  ;;  %s2489_s4 = sld [smem:[#allocation6_spill]] }
   0x6   :  { %s2490_s24 = sld [smem:[#allocation7_spill]]  ;;  %s2004_s2 = smov 80  }
   0x7   :  { %s2006_s3 = smov 112  }
   0x8   :  { %v66_v0 = vld [vmem:[%s2486_s23] sm:$0xff]  ;;  %v67_v1 = vld [vmem:[%s2486_s23 + $0x8] sm:$0xff]  ;;  %s2009_s23 = smov 16  }
   0x9   :  { %v71_v2 = vsel %vm70_vm0, %v66_v0, 0.0  ;;  %v77_v3 = vmul.f32 %v66_v0, %v66_v0  ;;  %v78_v4 = vmul.f32 %v67_v1, %v67_v1  ;;  %v74_v6 = vsel %vm70_vm0, %v67_v1, 0.0  ;;  %v1910_v9 = vld [vmem:[%s2487_s26] sm:$0xff]   ;;  %v1911_v10 = vld [vmem:[%s2487_s26 + $0x8] sm:$0xff]  }
   0xa   :  { %72 = vadd.xlane.f32.xlu0 %v71_v2  ;;  %1767 = vmatpush3.bf16.msra.mxu0 %v1910_v9  ;;  %v1626_v28 = vld [vmem:[%s2488_s30] ss:$0 sm:$0xff]  ;;  %s2008_s30 = smov 48  }
   0xb   :  { %v79_v5 = vsel %vm70_vm0, %v77_v3, 0.0  ;;  %v82_v7 = vsel %vm70_vm0, %v78_v4, 0.0  ;;  %1768 = vmatprep.subr.bf16.mxu0 %v2002_v8  ;;  %v1627_v33 = vld [vmem:[%s2489_s4] ss:$0 sm:$0xff] }
   0xc   :  { %80 = vadd.xlane.f32.xlu1 %v79_v5  ;;  %v1628_v38 = vld [vmem:[%s2490_s24] ss:$0 sm:$0xff] }
   0xe   :  { %75 = vadd.xlane.f32.xlu0 %v74_v6  ;;  %1769 = vmatpush3.bf16.msra.mxu0 %v1911_v10 }
   0xf   :  { %1780 = vmatprep.subr.bf16.mxu0 %v2002_v8 }
  0x10   :  { %83 = vadd.xlane.f32.xlu1 %v82_v7 }
  0x97   :  { %v73_v11 = vpop.xlane.xlu0 %72 }
  0x98   :  { %v85_v12 = vmul.f32 0.03125, %v73_v11 }
  0x99   :  { %v81_v13 = vpop.xlane.xlu1 %80 }
  0x9a   :  { %v89_v14 = vmul.f32 %v85_v12, %v85_v12  ;;  %v87_v15 = vmul.f32 0.03125, %v81_v13  ;;  %v93_v25 = vsub.f32 %v66_v0, %v85_v12 }
  0x9b   :  { %v76_v16 = vpop.xlane.xlu0 %75 }
  0x9c   :  { %v91_v17 = vsub.f32 %v87_v15, %v89_v14  ;;  %v86_v18 = vmul.f32 0.03125, %v76_v16 }
  0x9d   :  { %v84_v19 = vpop.xlane.xlu1 %83 }
  0x9e   :  { %v95_v20 = vadd.f32 1e-12, %v91_v17  ;;  %v90_v21 = vmul.f32 %v86_v18, %v86_v18  ;;  %v88_v22 = vmul.f32 0.03125, %v84_v19  ;;  %v94_v29 = vsub.f32 %v67_v1, %v86_v18 }
  0xa0   :  { %1934 = vrsqrt.f32 %v95_v20  ;;  %v92_v23 = vsub.f32 %v88_v22, %v90_v21 }
  0xa2   :  { %v96_v24 = vadd.f32 1e-12, %v92_v23 }
  0xa4   :  { %1936 = vrsqrt.f32 %v96_v24 }
  0xaa   :  { %v1935_v26 = vpop.eup %1934 }
  0xab   :  { %v99_v27 = vmul.f32 %v1935_v26, %v93_v25 }
  0xad   :  { %v107_v32 = vmul.f32 %v1626_v28, %v99_v27 }
  0xae   :  { %v1937_v30 = vpop.eup %1936 }
  0xaf   :  { %v100_v31 = vmul.f32 %v1937_v30, %v94_v29  ;;  %v2145_v35 = vadd.f32 %v1627_v33, %v107_v32 }
  0xb1   :  { %v108_v34 = vmul.f32 %v1626_v28, %v100_v31 }
  0xb3   :  { %v2147_v36 = vadd.f32 %v1627_v33, %v108_v34 }
  0xb5   :  { %v119_v37 = vpack.c.bf16 %v2147_v36, %v2145_v35 }
  0xb7   :  { %1771 = vmatmul.mubr.msk.bf16.vlgmr.msra.gmra.mrb[0].mxu0 %vm70_vm0, %v119_v37 }
  0xb8   :  { %1782 = vmatprep.mubr.msk.bf16.mxu0 %vm2003_vm1, %v2002_v8 }
 0x18a   :  { %v180_v39 = vpop.f32.mrb[0].mxu0 }
 0x18b   :  { %v1772_v40 = vpop.f32.mrb[1].mxu0  ;;  %v181_v42 = vadd.f32 %v1628_v38, %v180_v39 }
 0x18c   :  { %v183_v41 = vpop.f32.mrb[2].mxu0 }
 0x18d   :  { %v184_v43 = vadd.f32 %v1628_v38, %v183_v41  ;;  %v1773_v44 = vpop.f32.mrb[3].mxu0 }
 0x18f   :  { %v2157_v45 = vpack.c.bf16 %v184_v43, %v181_v42 }
 0x191   :  { %317 = vrot.lane.b32.xlu1 %v2157_v45, %s2004_s2  ;;  %189 = vrot.lane.b32.xlu0 %v2157_v45, %s2005_s25 }
 0x195   :  { %315 = vrot.lane.b32.xlu1 %v2157_v45, %s2006_s3 }
 0x203   :  { %v190_v46 = vpop.permute.xlu0 %189  ;;  %v318_v48 = vpop.permute.xlu1 %317 }
 0x204   :  { %v196_v47 = vsel %vm191_vm2, %v190_v46, 0  ;;  %v323_v49 = vsel %vm191_vm2, %v318_v48, 0 }
 0x205   :  { %1775 = vmatpush3.bf16.xpose.msra.mxu1 %v196_v47 }
 0x206   :  { %1786 = vmatprep.subr.bf16.mxu1 %v2002_v8 }
 0x207   :  { %v316_v50 = vpop.permute.xlu1 %315 }
 0x20c   :  { %1777 = vmatmul.mubr.msk.bf16.vlgmr.msra.gmra.mrb[0].mxu1 %vm191_vm2, %v2157_v45 }
 0x20d   :  { %1787 = vmatpush3.bf16.xpose.msra.mxu1 %v323_v49  ;;  %1788 = vmatprep.mubr.msk.bf16.mxu1 %vm2003_vm1, %v2002_v8 }
 0x20e   :  { %1798 = vmatprep.subr.bf16.mxu1 %v2002_v8 }
 0x214   :  { %1789 = vmatmul.mubr.msk.bf16.vlgmr.msra.gmra.mrb[4].mxu1 %vm191_vm2, %v316_v50 }
 0x215   :  { %1802 = vmatprep.mubr.msk.bf16.mxu1 %vm2003_vm1, %v2002_v8 }
 0x2df   :  { %v232_v51 = vpop.f32.mrb[0].mxu1 }
 0x2e0   :  { %v239_v53 = vmul.f32 0.25, %v232_v51  ;;  %v1778_v54 = vpop.f32.mrb[1].mxu1 }
 0x2e1   :  { %v235_v55 = vpop.f32.mrb[2].mxu1  ;;  %v1913_v54 = vld [vmem:[%s2463_s6 + $0x8] sm:$0xff]  }
 0x2e2   :  { %v240_v57 = vmul.f32 0.25, %v235_v55  ;;  %v1779_v58 = vpop.f32.mrb[3].mxu1  ;;  %v241_v59 = vadd.f32 %v239_v53, %v2179_v52  ;;  %v1912_v53 = vld [vmem:[%s2463_s6] sm:$0xff]  }
 0x2e3   :  { %1799 = vmatpush3.bf16.msra.mxu1 %v1912_v53 }
 0x2e4   :  { %v243_v60 = vsel %vm191_vm2, %v241_v59, -inf  ;;  %v242_v61 = vadd.f32 %v240_v57, %v2184_v56  ;;  %1800 = vmatprep.subr.bf16.mxu1 %v2002_v8 }
 0x2e5   :  { %244 = vmax.xlane.f32.xlu1 %v243_v60 }
 0x2e6   :  { %v246_v62 = vsel %vm191_vm2, %v242_v61, -inf }
 0x2e7   :  { %247 = vmax.xlane.f32.xlu0 %v246_v62  ;;  %v359_v63 = vpop.f32.mrb[4].mxu1  ;;  %1801 = vmatpush3.bf16.msra.mxu1 %v1913_v54 }
 0x2e8   :  { %v366_v0 = vmul.f32 0.25, %v359_v63  ;;  %v1790_v1 = vpop.f32.mrb[5].mxu1  ;;  %1814 = vmatprep.subr.bf16.mxu1 %v2002_v8 }
 0x2e9   :  { %v362_v2 = vpop.f32.mrb[6].mxu1  ;;  %v1636_v1 = vld [vmem:[%s2464_s7] ss:$0 sm:$0xff] }
 0x2ea   :  { %v367_v3 = vmul.f32 0.25, %v362_v2  ;;  %v1791_v4 = vpop.f32.mrb[7].mxu1  ;;  %v368_v5 = vadd.f32 %v366_v0, %v2179_v52 }
 0x2ec   :  { %v370_v6 = vsel %vm191_vm2, %v368_v5, -inf  ;;  %v369_v7 = vadd.f32 %v367_v3, %v2184_v56 }
 0x2ed   :  { %371 = vmax.xlane.f32.xlu0 %v370_v6 }
 0x2ee   :  { %v373_v9 = vsel %vm191_vm2, %v369_v7, -inf }
 0x2f1   :  { %374 = vmax.xlane.f32.xlu0 %v373_v9 }
 0x372   :  { %v245_v10 = vpop.xlane.xlu1 %244 }
 0x373   :  { %v249_v11 = vsub.f32 %v241_v59, %v245_v10 }
 0x374   :  { %v248_v12 = vpop.xlane.xlu0 %247 }
 0x375   :  { %v251_v13 = vmul.f32 1.442695, %v249_v11  ;;  %v250_v14 = vsub.f32 %v242_v61, %v248_v12 }
 0x377   :  { %1938 = vpow2.f32 %v251_v13  ;;  %v253_v15 = vmul.f32 1.442695, %v250_v14 }
 0x379   :  { %1940 = vpow2.f32 %v253_v15 }
 0x37a   :  { %v372_v16 = vpop.xlane.xlu0 %371 }
 0x37b   :  { %v376_v17 = vsub.f32 %v368_v5, %v372_v16 }
 0x37d   :  { %v378_v18 = vmul.f32 1.442695, %v376_v17 }
 0x37e   :  { %v375_v19 = vpop.xlane.xlu0 %374 }
 0x37f   :  { %1942 = vpow2.f32 %v378_v18  ;;  %v377_v20 = vsub.f32 %v369_v7, %v375_v19 }
 0x381   :  { %v1939_v21 = vpop.eup %1938  ;;  %v380_v22 = vmul.f32 1.442695, %v377_v20 }
 0x382   :  { %v255_v23 = vsel %vm191_vm2, %v1939_v21, 0.0 }
 0x383   :  { %v1941_v24 = vpop.eup %1940  ;;  %1944 = vpow2.f32 %v380_v22  ;;  %256 = vadd.xlane.f32.xlu1 %v255_v23 }
 0x384   :  { %v258_v25 = vsel %vm191_vm2, %v1941_v24, 0.0 }
 0x385   :  { %259 = vadd.xlane.f32.xlu0 %v258_v25 }
 0x389   :  { %v1943_v26 = vpop.eup %1942 }
 0x38a   :  { %v382_v27 = vsel %vm191_vm2, %v1943_v26, 0.0 }
 0x38b   :  { %383 = vadd.xlane.f32.xlu1 %v382_v27 }
 0x38d   :  { %v1945_v28 = vpop.eup %1944 }
 0x38e   :  { %v385_v29 = vsel %vm191_vm2, %v1945_v28, 0.0 }
 0x38f   :  { %386 = vadd.xlane.f32.xlu0 %v385_v29 }
 0x39c   :  { %266 = vrot.lane.b32.xlu1 %v2157_v45, %s2007_s1 }
 0x3a5   :  { %393 = vrot.lane.b32.xlu0 %v2157_v45, %s2008_s30 }
 0x410   :  { %v257_v30 = vpop.xlane.xlu1 %256 }
 0x411   :  { %1946 = vrcp.f32 %v257_v30 }
 0x412   :  { %v260_v31 = vpop.xlane.xlu0 %259 }
 0x413   :  { %1948 = vrcp.f32 %v260_v31 }
 0x418   :  { %v384_v32 = vpop.xlane.xlu1 %383 }
 0x419   :  { %1950 = vrcp.f32 %v384_v32 }
 0x41b   :  { %v1947_v33 = vpop.eup %1946 }
 0x41c   :  { %v267_v34 = vpop.permute.xlu1 %266  ;;  %v387_v37 = vpop.xlane.xlu0 %386  ;;  %v263_v39 = vmul.f32 %v1947_v33, %v1939_v21 }
 0x41d   :  { %v1949_v38 = vpop.eup %1948  ;;  %1952 = vrcp.f32 %v387_v37  ;;  %1781 = vmatpush3.bf16.msra.mxu0 %v267_v34  ;;  %v1640_v34 = vld [vmem:[%s2466_s8] ss:$0 sm:$0xff] }
 0x41e   :  { %v264_v40 = vmul.f32 %v1949_v38, %v1941_v24  ;;  %1792 = vmatprep.subr.bf16.mxu0 %v2002_v8 }
 0x420   :  { %v394_v41 = vpop.permute.xlu0 %393  ;;  %v265_v42 = vpack.c.bf16 %v264_v40, %v263_v39 }
 0x422   :  { %1783 = vmatmul.mubr.msk.bf16.vlgmr.msra.gmra.mrb[4].mxu0 %vm191_vm2, %v265_v42 }
 0x423   :  { %1793 = vmatpush3.bf16.msra.mxu0 %v394_v41  ;;  %1794 = vmatprep.mubr.msk.bf16.mxu0 %vm2003_vm1, %v2002_v8  ;;  %v1951_v43 = vpop.eup %1950  ;;  %v1641_v41 = vld [vmem:[%s2467_s9] ss:$0 sm:$0xff] }
 0x424   :  { %1806 = vmatprep.subr.bf16.mxu0 %v2002_v8  ;;  %v390_v45 = vmul.f32 %v1951_v43, %v1943_v26 }
 0x427   :  { %v1953_v44 = vpop.eup %1952 }
 0x428   :  { %v391_v46 = vmul.f32 %v1953_v44, %v1945_v28 }
 0x42a   :  { %v392_v47 = vpack.c.bf16 %v391_v46, %v390_v45  ;;  %v1916_v46 = vld [vmem:[%s2468_s12] sm:$0xff]  }
 0x42c   :  { %1795 = vmatmul.mubr.msk.bf16.vlgmr.msra.gmra.mrb[8].mxu0 %vm191_vm2, %v392_v47  ;;  %v1917_v47 = vld [vmem:[%s2468_s12 + $0x8] sm:$0xff]  }
 0x42d   :  { %1810 = vmatprep.mubr.msk.bf16.mxu0 %vm2003_vm1, %v2002_v8 }
 0x4f5   :  { %v306_v48 = vpop.f32.mrb[4].mxu0 }
 0x4f6   :  { %313 = vst.msk [vmem:[#allocation2] sm:$0xff] %vm191_vm2, %v306_v48  ;;  %v1784_v49 = vpop.f32.mrb[5].mxu0  ;;  %v1918_v48 = vld [vmem:[%s2468_s12 + $0x10] sm:$0xff]  }
 0x4f7   :  { %v309_v50 = vpop.f32.mrb[6].mxu0  ;;  %v1919_v49 = vld [vmem:[%s2468_s12 + $0x18] sm:$0xff]  }
 0x4f8   :  { %314 = vst.msk [vmem:[#allocation2 + $0x8] sm:$0xff] %vm191_vm2, %v309_v50  ;;  %v1785_v51 = vpop.f32.mrb[7].mxu0  ;;  %v1642_v50 = vld [vmem:[%s2469_s11] ss:$0 sm:$0xff] }
 0x4ff   :  { %v433_v55 = vpop.f32.mrb[8].mxu0 }
 0x500   :  { %442 = vrot.lane.b32.xlu1 %v433_v55, %s2009_s23  ;;  %v1796_v57 = vpop.f32.mrb[9].mxu0 }
 0x501   :  { %v436_v58 = vpop.f32.mrb[10].mxu0 }
 0x502   :  { %v1797_v59 = vpop.f32.mrb[11].mxu0 }
 0x504   :  { %444 = vrot.lane.b32.xlu1 %v436_v58, %s2009_s23 }
 0x572   :  { %v443_v60 = vpop.permute.xlu1 %442 }
 0x573   :  { %449 = vst.msk [vmem:[#allocation2] sm:$0xff] %vm448_vm3, %v443_v60 }
 0x576   :  { %v445_v61 = vpop.permute.xlu1 %444 }
 0x577   :  { %450 = vst.msk [vmem:[#allocation2 + $0x8] sm:$0xff] %vm448_vm3, %v445_v61 }
 0x57a   :  { %v451_v62 = vld [vmem:[#allocation2] sm:$0xff] }
 0x57e   :  { %v452_v63 = vld [vmem:[#allocation2 + $0x8] sm:$0xff] }
 0x57f   :  { %v453_v0 = vpack.c.bf16 %v452_v63, %v451_v62 }
 0x581   :  { %1803 = vmatmul.mubr.msk.bf16.vlgmr.msra.gmra.mrb[8].mxu1 %vm70_vm0, %v453_v0 }
 0x582   :  { %1822 = vmatprep.mubr.msk.bf16.mxu1 %vm2003_vm1, %v2002_v8  ;;  %1815 = vmatpush3.bf16.msra.mxu1 %v1916_v46 }
 0x583   :  { %1816 = vmatprep.subr.bf16.mxu1 %v2002_v8 }
 0x586   :  { %1817 = vmatpush3.bf16.msra.mxu1 %v1917_v47 }
 0x587   :  { %1818 = vmatprep.subr.bf16.mxu1 %v2002_v8 }
 0x58a   :  { %1819 = vmatpush3.bf16.msra.mxu1 %v1918_v48  ;;  %v1652_v48 = vld [vmem:[%s2471_s14] ss:$0 sm:$0xff] }
 0x58b   :  { %1820 = vmatprep.subr.bf16.mxu1 %v2002_v8 }
 0x58e   :  { %1821 = vmatpush3.bf16.msra.mxu1 %v1919_v49 }
 0x58f   :  { %1840 = vmatprep.subr.bf16.mxu1 %v2002_v8 }
 0x654   :  { %v514_v2 = vpop.f32.mrb[8].mxu1 }
 0x655   :  { %v515_v3 = vadd.f32 %v1636_v1, %v514_v2  ;;  %v1804_v4 = vpop.f32.mrb[9].mxu1 }
 0x656   :  { %v517_v5 = vpop.f32.mrb[10].mxu1 }
 0x657   :  { %v521_v6 = vadd.f32 %v515_v3, %v2145_v35  ;;  %v518_v7 = vadd.f32 %v1636_v1, %v517_v5  ;;  %v1805_v9 = vpop.f32.mrb[11].mxu1  ;;  %v1914_v35 = vld [vmem:[%s2465_s10] sm:$0xff]  }
 0x658   :  { %1807 = vmatpush3.bf16.msra.mxu0 %v1914_v35 }
 0x659   :  { %v522_v10 = vadd.f32 %v518_v7, %v2147_v36  ;;  %v525_v11 = vsel %vm70_vm0, %v521_v6, 0.0  ;;  %v531_v13 = vmul.f32 %v521_v6, %v521_v6  ;;  %v1915_v36 = vld [vmem:[%s2465_s10 + $0x8] sm:$0xff]   ;;  %1808 = vmatprep.subr.bf16.mxu0 %v2002_v8 }
 0x65a   :  { %526 = vadd.xlane.f32.xlu1 %v525_v11 }
 0x65b   :  { %v528_v12 = vsel %vm70_vm0, %v522_v10, 0.0  ;;  %v533_v14 = vsel %vm70_vm0, %v531_v13, 0.0  ;;  %v532_v15 = vmul.f32 %v522_v10, %v522_v10 }
 0x65c   :  { %529 = vadd.xlane.f32.xlu0 %v528_v12  ;;  %1809 = vmatpush3.bf16.msra.mxu0 %v1915_v36 }
 0x65d   :  { %v536_v16 = vsel %vm70_vm0, %v532_v15, 0.0  ;;  %1826 = vmatprep.subr.bf16.mxu0 %v2002_v8  ;;  %v1646_v15 = vld [vmem:[%s2470_s13] ss:$0 sm:$0xff] }
 0x660   :  { %534 = vadd.xlane.f32.xlu0 %v533_v14 }
 0x664   :  { %537 = vadd.xlane.f32.xlu0 %v536_v16 }
 0x6e7   :  { %v527_v17 = vpop.xlane.xlu1 %526 }
 0x6e8   :  { %v539_v19 = vmul.f32 0.03125, %v527_v17 }
 0x6e9   :  { %v530_v18 = vpop.xlane.xlu0 %529 }
 0x6ea   :  { %v543_v21 = vmul.f32 %v539_v19, %v539_v19  ;;  %v540_v22 = vmul.f32 0.03125, %v530_v18  ;;  %v547_v31 = vsub.f32 %v521_v6, %v539_v19 }
 0x6ec   :  { %v544_v26 = vmul.f32 %v540_v22, %v540_v22  ;;  %v548_v37 = vsub.f32 %v522_v10, %v540_v22 }
 0x6ed   :  { %v535_v20 = vpop.xlane.xlu0 %534 }
 0x6ee   :  { %v541_v23 = vmul.f32 0.03125, %v535_v20 }
 0x6f0   :  { %v545_v24 = vsub.f32 %v541_v23, %v543_v21 }
 0x6f1   :  { %v538_v25 = vpop.xlane.xlu0 %537 }
 0x6f2   :  { %v549_v27 = vadd.f32 1e-12, %v545_v24  ;;  %v542_v28 = vmul.f32 0.03125, %v538_v25 }
 0x6f4   :  { %1954 = vrsqrt.f32 %v549_v27  ;;  %v546_v29 = vsub.f32 %v542_v28, %v544_v26  ;;  %v1920_v28 = vld [vmem:[%s2487_s26 + $0x10] sm:$0xff]  }
 0x6f6   :  { %v550_v30 = vadd.f32 1e-12, %v546_v29  ;;  %v1921_v29 = vld [vmem:[%s2487_s26 + $0x18] sm:$0xff]  }
 0x6f8   :  { %1956 = vrsqrt.f32 %v550_v30 }
 0x6fe   :  { %v1955_v32 = vpop.eup %1954 }
 0x6ff   :  { %v553_v33 = vmul.f32 %v1955_v32, %v547_v31 }
 0x701   :  { %v561_v40 = vmul.f32 %v1640_v34, %v553_v33 }
 0x702   :  { %v1957_v38 = vpop.eup %1956 }
 0x703   :  { %v554_v39 = vmul.f32 %v1957_v38, %v548_v37  ;;  %v569_v43 = vadd.f32 %v1641_v41, %v561_v40 }
 0x705   :  { %v562_v42 = vmul.f32 %v1640_v34, %v554_v39 }
 0x707   :  { %v570_v44 = vadd.f32 %v1641_v41, %v562_v42 }
 0x709   :  { %v571_v45 = vpack.c.bf16 %v570_v44, %v569_v43 }
 0x70b   :  { %1811 = vmatmul.mubr.msk.bf16.vlgmr.msra.gmra.mrb[12].mxu0 %vm70_vm0, %v571_v45 }
 0x70c   :  { %1830 = vmatprep.mubr.msk.bf16.mxu0 %vm2003_vm1, %v2002_v8  ;;  %1827 = vmatpush3.bf16.msra.mxu0 %v1920_v28 }
 0x70d   :  { %1828 = vmatprep.subr.bf16.mxu0 %v2002_v8 }
 0x710   :  { %1829 = vmatpush3.bf16.msra.mxu0 %v1921_v29 }
 0x711   :  { %1834 = vmatprep.subr.bf16.mxu0 %v2002_v8 }
 0x7de   :  { %v632_v51 = vpop.f32.mrb[12].mxu0 }
 0x7df   :  { %v633_v53 = vadd.f32 %v1642_v50, %v632_v51  ;;  %v1812_v54 = vpop.f32.mrb[13].mxu0 }
 0x7e0   :  { %v635_v55 = vpop.f32.mrb[14].mxu0 }
 0x7e1   :  { %v641_v57 = vmul.f32 0.044715, %v633_v53  ;;  %v636_v58 = vadd.f32 %v1642_v50, %v635_v55  ;;  %v1813_v59 = vpop.f32.mrb[15].mxu0  ;;  %v639_v9 = vmul.f32 0.5, %v633_v53  ;;  %v1653_v55 = vld [vmem:[%s2472_s15] ss:$0 sm:$0xff] }
 0x7e3   :  { %v643_v60 = vmul.f32 %v641_v57, %v633_v53  ;;  %v642_v61 = vmul.f32 0.044715, %v636_v58  ;;  %v640_v10 = vmul.f32 0.5, %v636_v58 }
 0x7e5   :  { %v645_v62 = vmul.f32 %v643_v60, %v633_v53  ;;  %v644_v63 = vmul.f32 %v642_v61, %v636_v58  ;;  %v1659_v61 = vld [vmem:[%s2490_s24 + $0x1] ss:$0 sm:$0xff] }
 0x7e7   :  { %v647_v0 = vadd.f32 %v645_v62, %v633_v53  ;;  %v646_v1 = vmul.f32 %v644_v63, %v636_v58 }
 0x7e9   :  { %v649_v2 = vmul.f32 0.7978846, %v647_v0  ;;  %v648_v3 = vadd.f32 %v646_v1, %v636_v58 }
 0x7eb   :  { %1958 = vtanh.f32 %v649_v2  ;;  %v650_v4 = vmul.f32 0.7978846, %v648_v3 }
 0x7ed   :  { %1960 = vtanh.f32 %v650_v4 }
 0x7f5   :  { %v1959_v5 = vpop.eup %1958 }
 0x7f6   :  { %v653_v6 = vadd.f32 1.0, %v1959_v5 }
 0x7f7   :  { %v1961_v7 = vpop.eup %1960 }
 0x7f8   :  { %v654_v11 = vadd.f32 1.0, %v1961_v7  ;;  %v655_v12 = vmul.f32 %v653_v6, %v639_v9 }
 0x7fa   :  { %v656_v13 = vmul.f32 %v654_v11, %v640_v10 }
 0x7fc   :  { %v657_v14 = vpack.c.bf16 %v656_v13, %v655_v12 }
 0x7fe   :  { %1823 = vmatmul.mubr.msk.bf16.vlgmr.msra.gmra.mrb[12].mxu1 %vm697_vm4, %v657_v14 }
 0x7ff   :  { %1842 = vmatprep.mubr.msk.bf16.mxu1 %vm2003_vm1, %v2002_v8 }
 0x8d1   :  { %v735_v16 = vpop.f32.mrb[12].mxu1 }
 0x8d2   :  { %v736_v35 = vadd.f32 %v1646_v15, %v735_v16  ;;  %v1824_v36 = vpop.f32.mrb[13].mxu1 }
 0x8d3   :  { %v738_v17 = vpop.f32.mrb[14].mxu1 }
 0x8d4   :  { %v742_v18 = vadd.f32 %v736_v35, %v569_v43  ;;  %v739_v19 = vadd.f32 %v1646_v15, %v738_v17  ;;  %v1825_v20 = vpop.f32.mrb[15].mxu1 }
 0x8d6   :  { %v743_v21 = vadd.f32 %v739_v19, %v570_v44  ;;  %v746_v22 = vsel %vm70_vm0, %v742_v18, 0.0  ;;  %v752_v23 = vmul.f32 %v742_v18, %v742_v18 }
 0x8d7   :  { %747 = vadd.xlane.f32.xlu1 %v746_v22 }
 0x8d8   :  { %v749_v24 = vsel %vm70_vm0, %v743_v21, 0.0  ;;  %v753_v25 = vmul.f32 %v743_v21, %v743_v21  ;;  %v754_v26 = vsel %vm70_vm0, %v752_v23, 0.0 }
 0x8d9   :  { %750 = vadd.xlane.f32.xlu0 %v749_v24 }
 0x8da   :  { %v757_v27 = vsel %vm70_vm0, %v753_v25, 0.0 }
 0x8db   :  { %755 = vadd.xlane.f32.xlu1 %v754_v26 }
 0x8dd   :  { %758 = vadd.xlane.f32.xlu0 %v757_v27 }
 0x964   :  { %v748_v30 = vpop.xlane.xlu1 %747 }
 0x965   :  { %v760_v31 = vmul.f32 0.03125, %v748_v30 }
 0x966   :  { %v751_v32 = vpop.xlane.xlu0 %750 }
 0x967   :  { %v761_v33 = vmul.f32 0.03125, %v751_v32  ;;  %v764_v37 = vmul.f32 %v760_v31, %v760_v31  ;;  %v768_v46 = vsub.f32 %v742_v18, %v760_v31 }
 0x968   :  { %v756_v34 = vpop.xlane.xlu1 %755 }
 0x969   :  { %v762_v38 = vmul.f32 0.03125, %v756_v34  ;;  %v765_v40 = vmul.f32 %v761_v33, %v761_v33  ;;  %v769_v49 = vsub.f32 %v743_v21, %v761_v33 }
 0x96a   :  { %v759_v39 = vpop.xlane.xlu0 %758 }
 0x96b   :  { %v766_v41 = vsub.f32 %v762_v38, %v764_v37  ;;  %v763_v42 = vmul.f32 0.03125, %v759_v39 }
 0x96d   :  { %v770_v43 = vadd.f32 1e-12, %v766_v41  ;;  %v767_v44 = vsub.f32 %v763_v42, %v765_v40 }
 0x96f   :  { %1962 = vrsqrt.f32 %v770_v43  ;;  %v771_v45 = vadd.f32 1e-12, %v767_v44 }
 0x971   :  { %1964 = vrsqrt.f32 %v771_v45 }
 0x979   :  { %v1963_v47 = vpop.eup %1962 }
 0x97a   :  { %v774_v50 = vmul.f32 %v1963_v47, %v768_v46 }
 0x97b   :  { %v1965_v51 = vpop.eup %1964 }
 0x97c   :  { %v775_v53 = vmul.f32 %v1965_v51, %v769_v49  ;;  %v782_v54 = vmul.f32 %v1652_v48, %v774_v50 }
 0x97e   :  { %v783_v57 = vmul.f32 %v1652_v48, %v775_v53  ;;  %v2296_v58 = vadd.f32 %v1653_v55, %v782_v54 }
 0x980   :  { %v2298_v59 = vadd.f32 %v1653_v55, %v783_v57 }
 0x982   :  { %v792_v60 = vpack.c.bf16 %v2298_v59, %v2296_v58 }
 0x984   :  { %1831 = vmatmul.mubr.msk.bf16.vlgmr.msra.gmra.mrb[16].mxu0 %vm70_vm0, %v792_v60 }
 0x985   :  { %1836 = vmatprep.mubr.msk.bf16.mxu0 %vm2003_vm1, %v2002_v8 }
 0xa57   :  { %v855_v62 = vpop.f32.mrb[16].mxu0 }
 0xa58   :  { %v1832_v63 = vpop.f32.mrb[17].mxu0  ;;  %v856_v1 = vadd.f32 %v1659_v61, %v855_v62 }
 0xa59   :  { %v858_v0 = vpop.f32.mrb[18].mxu0 }
 0xa5a   :  { %v859_v2 = vadd.f32 %v1659_v61, %v858_v0  ;;  %v1833_v3 = vpop.f32.mrb[19].mxu0 }
 0xa5c   :  { %v2308_v4 = vpack.c.bf16 %v859_v2, %v856_v1 }
 0xa5e   :  { %991 = vrot.lane.b32.xlu0 %v2308_v4, %s2004_s2  ;;  %864 = vrot.lane.b32.xlu1 %v2308_v4, %s2005_s25 }
 0xa62   :  { %989 = vrot.lane.b32.xlu1 %v2308_v4, %s2006_s3 }
 0xad0   :  { %v865_v5 = vpop.permute.xlu1 %864  ;;  %v992_v7 = vpop.permute.xlu0 %991 }
 0xad1   :  { %v870_v6 = vsel %vm191_vm2, %v865_v5, 0  ;;  %v997_v9 = vsel %vm191_vm2, %v992_v7, 0 }
 0xad2   :  { %1835 = vmatpush3.bf16.xpose.msra.mxu0 %v870_v6  ;;  %v1922_v6 = vld [vmem:[%s2463_s6 + $0x10] sm:$0xff]  }
 0xad3   :  { %1846 = vmatprep.subr.bf16.mxu0 %v2002_v8 }
 0xad4   :  { %v990_v10 = vpop.permute.xlu1 %989 }
 0xad9   :  { %1837 = vmatmul.mubr.msk.bf16.vlgmr.msra.gmra.mrb[20].mxu0 %vm191_vm2, %v2308_v4 }
 0xada   :  { %1847 = vmatpush3.bf16.xpose.msra.mxu0 %v997_v9  ;;  %1848 = vmatprep.mubr.msk.bf16.mxu0 %vm2003_vm1, %v2002_v8 }
 0xadb   :  { %1858 = vmatprep.subr.bf16.mxu0 %v2002_v8 }
 0xae1   :  { %1849 = vmatmul.mubr.msk.bf16.vlgmr.msra.gmra.mrb[24].mxu0 %vm191_vm2, %v990_v10  ;;  %v1923_v10 = vld [vmem:[%s2463_s6 + $0x18] sm:$0xff]  }
 0xae2   :  { %1862 = vmatprep.mubr.msk.bf16.mxu0 %vm2003_vm1, %v2002_v8  ;;  %1859 = vmatpush3.bf16.msra.mxu0 %v1922_v6 }
 0xae3   :  { %1860 = vmatprep.subr.bf16.mxu0 %v2002_v8 }
 0xae6   :  { %1861 = vmatpush3.bf16.msra.mxu0 %v1923_v10 }
 0xae7   :  { %1874 = vmatprep.subr.bf16.mxu0 %v2002_v8 }
 0xbac   :  { %v906_v11 = vpop.f32.mrb[20].mxu0 }
 0xbad   :  { %v913_v12 = vmul.f32 0.25, %v906_v11  ;;  %v1838_v13 = vpop.f32.mrb[21].mxu0 }
 0xbae   :  { %v909_v14 = vpop.f32.mrb[22].mxu0 }
 0xbaf   :  { %v914_v15 = vmul.f32 0.25, %v909_v14  ;;  %v1839_v16 = vpop.f32.mrb[23].mxu0  ;;  %v915_v35 = vadd.f32 %v913_v12, %v2179_v52 }
 0xbb1   :  { %v917_v36 = vsel %vm191_vm2, %v915_v35, -inf  ;;  %v916_v17 = vadd.f32 %v914_v15, %v2184_v56 }
 0xbb2   :  { %918 = vmax.xlane.f32.xlu1 %v917_v36 }
 0xbb3   :  { %v920_v18 = vsel %vm191_vm2, %v916_v17, -inf }
 0xbb4   :  { %921 = vmax.xlane.f32.xlu0 %v920_v18  ;;  %v1033_v19 = vpop.f32.mrb[24].mxu0 }
 0xbb5   :  { %v1040_v20 = vmul.f32 0.25, %v1033_v19  ;;  %v1850_v21 = vpop.f32.mrb[25].mxu0  ;;  %v1672_v19 = vld [vmem:[%s2464_s7 + $0x1] ss:$0 sm:$0xff] }
 0xbb6   :  { %v1036_v22 = vpop.f32.mrb[26].mxu0 }
 0xbb7   :  { %v1041_v23 = vmul.f32 0.25, %v1036_v22  ;;  %v1851_v24 = vpop.f32.mrb[27].mxu0  ;;  %v1042_v25 = vadd.f32 %v1040_v20, %v2179_v52 }
 0xbb9   :  { %v1044_v26 = vsel %vm191_vm2, %v1042_v25, -inf  ;;  %v1043_v27 = vadd.f32 %v1041_v23, %v2184_v56 }
 0xbba   :  { %1045 = vmax.xlane.f32.xlu0 %v1044_v26 }
 0xbbb   :  { %v1047_v28 = vsel %vm191_vm2, %v1043_v27, -inf }
 0xbbc   :  { %1048 = vmax.xlane.f32.xlu1 %v1047_v28 }
 0xc3f   :  { %v919_v29 = vpop.xlane.xlu1 %918 }
 0xc40   :  { %v923_v30 = vsub.f32 %v915_v35, %v919_v29 }
 0xc41   :  { %v922_v31 = vpop.xlane.xlu0 %921 }
 0xc42   :  { %v925_v32 = vmul.f32 1.442695, %v923_v30  ;;  %v924_v33 = vsub.f32 %v916_v17, %v922_v31 }
 0xc44   :  { %1966 = vpow2.f32 %v925_v32  ;;  %v927_v34 = vmul.f32 1.442695, %v924_v33 }
 0xc46   :  { %1968 = vpow2.f32 %v927_v34 }
 0xc47   :  { %v1046_v37 = vpop.xlane.xlu0 %1045 }
 0xc48   :  { %v1050_v38 = vsub.f32 %v1042_v25, %v1046_v37 }
 0xc49   :  { %v1049_v39 = vpop.xlane.xlu1 %1048 }
 0xc4a   :  { %v1052_v52 = vmul.f32 1.442695, %v1050_v38  ;;  %v1051_v40 = vsub.f32 %v1043_v27, %v1049_v39 }
 0xc4c   :  { %1970 = vpow2.f32 %v1052_v52  ;;  %v1054_v41 = vmul.f32 1.442695, %v1051_v40 }
 0xc4e   :  { %v1967_v56 = vpop.eup %1966  ;;  %1972 = vpow2.f32 %v1054_v41 }
 0xc4f   :  { %v929_v42 = vsel %vm191_vm2, %v1967_v56, 0.0 }
 0xc50   :  { %v1969_v43 = vpop.eup %1968  ;;  %930 = vadd.xlane.f32.xlu0 %v929_v42 }
 0xc51   :  { %v932_v44 = vsel %vm191_vm2, %v1969_v43, 0.0 }
 0xc52   :  { %933 = vadd.xlane.f32.xlu1 %v932_v44 }
 0xc56   :  { %v1971_v45 = vpop.eup %1970 }
 0xc57   :  { %v1056_v46 = vsel %vm191_vm2, %v1971_v45, 0.0 }
 0xc58   :  { %v1973_v47 = vpop.eup %1972  ;;  %1057 = vadd.xlane.f32.xlu0 %v1056_v46 }
 0xc59   :  { %v1059_v48 = vsel %vm191_vm2, %v1973_v47, 0.0 }
 0xc5a   :  { %1060 = vadd.xlane.f32.xlu1 %v1059_v48 }
 0xc6b   :  { %1067 = vrot.lane.b32.xlu1 %v2308_v4, %s2008_s30 }
 0xc6e   :  { %940 = vrot.lane.b32.xlu0 %v2308_v4, %s2007_s1 }
 0xcdd   :  { %v931_v49 = vpop.xlane.xlu0 %930 }
 0xcde   :  { %1974 = vrcp.f32 %v931_v49 }
 0xcdf   :  { %v934_v50 = vpop.xlane.xlu1 %933 }
 0xce0   :  { %1976 = vrcp.f32 %v934_v50 }
 0xce5   :  { %v1058_v51 = vpop.xlane.xlu0 %1057 }
 0xce6   :  { %1978 = vrcp.f32 %v1058_v51  ;;  %v1678_v51 = vld [vmem:[%s2466_s8 + $0x1] ss:$0 sm:$0xff] }
 0xce7   :  { %v1061_v53 = vpop.xlane.xlu1 %1060 }
 0xce8   :  { %v1975_v54 = vpop.eup %1974  ;;  %1980 = vrcp.f32 %v1061_v53 }
 0xce9   :  { %v941_v55 = vpop.permute.xlu0 %940  ;;  %v937_v60 = vmul.f32 %v1975_v54, %v1967_v56 }
 0xcea   :  { %v1977_v57 = vpop.eup %1976  ;;  %1841 = vmatpush3.bf16.msra.mxu1 %v941_v55 }
 0xceb   :  { %v938_v61 = vmul.f32 %v1977_v57, %v1969_v43  ;;  %1852 = vmatprep.subr.bf16.mxu1 %v2002_v8  ;;  %v1068_v63 = vpop.permute.xlu1 %1067 }
 0xced   :  { %v939_v62 = vpack.c.bf16 %v938_v61, %v937_v60  ;;  %v1679_v60 = vld [vmem:[%s2467_s9 + $0x1] ss:$0 sm:$0xff] }
 0xcef   :  { %1843 = vmatmul.mubr.msk.bf16.vlgmr.msra.gmra.mrb[16].mxu1 %vm191_vm2, %v939_v62 }
 0xcf0   :  { %v1979_v0 = vpop.eup %1978  ;;  %1853 = vmatpush3.bf16.msra.mxu1 %v1068_v63  ;;  %1854 = vmatprep.mubr.msk.bf16.mxu1 %vm2003_vm1, %v2002_v8 }
 0xcf1   :  { %1866 = vmatprep.subr.bf16.mxu1 %v2002_v8  ;;  %v1064_v2 = vmul.f32 %v1979_v0, %v1971_v45 }
 0xcf2   :  { %v1981_v1 = vpop.eup %1980 }
 0xcf3   :  { %v1065_v3 = vmul.f32 %v1981_v1, %v1973_v47  ;;  %v1926_v1 = vld [vmem:[%s2468_s12 + $0x20] sm:$0xff]  }
 0xcf5   :  { %v1066_v4 = vpack.c.bf16 %v1065_v3, %v1064_v2  ;;  %v1927_v2 = vld [vmem:[%s2468_s12 + $0x28] sm:$0xff]   ;;  %v1928_v3 = vld [vmem:[%s2468_s12 + $0x30] sm:$0xff]  }
 0xcf7   :  { %1855 = vmatmul.mubr.msk.bf16.vlgmr.msra.gmra.mrb[20].mxu1 %vm191_vm2, %v1066_v4  ;;  %v1929_v4 = vld [vmem:[%s2468_s12 + $0x38] sm:$0xff]  }
 0xcf8   :  { %1870 = vmatprep.mubr.msk.bf16.mxu1 %vm2003_vm1, %v2002_v8 }
 0xdc2   :  { %v980_v5 = vpop.f32.mrb[16].mxu1 }
 0xdc3   :  { %987 = vst.msk [vmem:[#allocation2] sm:$0xff] %vm191_vm2, %v980_v5  ;;  %v1844_v7 = vpop.f32.mrb[17].mxu1  ;;  %v1685_v5 = vld [vmem:[%s2469_s11 + $0x1] ss:$0 sm:$0xff] }
 0xdc4   :  { %v983_v9 = vpop.f32.mrb[18].mxu1 }
 0xdc5   :  { %988 = vst.msk [vmem:[#allocation2 + $0x8] sm:$0xff] %vm191_vm2, %v983_v9  ;;  %v1845_v11 = vpop.f32.mrb[19].mxu1 }
 0xdca   :  { %v1107_v12 = vpop.f32.mrb[20].mxu1 }
 0xdcb   :  { %1116 = vrot.lane.b32.xlu1 %v1107_v12, %s2009_s23  ;;  %v1856_v13 = vpop.f32.mrb[21].mxu1 }
 0xdcc   :  { %v1110_v14 = vpop.f32.mrb[22].mxu1 }
 0xdcd   :  { %v1857_v15 = vpop.f32.mrb[23].mxu1 }
 0xdcf   :  { %1118 = vrot.lane.b32.xlu1 %v1110_v14, %s2009_s23 }
 0xe3d   :  { %v1117_v16 = vpop.permute.xlu1 %1116 }
 0xe3e   :  { %1122 = vst.msk [vmem:[#allocation2] sm:$0xff] %vm448_vm3, %v1117_v16 }
 0xe41   :  { %v1119_v35 = vpop.permute.xlu1 %1118 }
 0xe42   :  { %1123 = vst.msk [vmem:[#allocation2 + $0x8] sm:$0xff] %vm448_vm3, %v1119_v35 }
 0xe45   :  { %v1124_v36 = vld [vmem:[#allocation2] sm:$0xff] }
 0xe49   :  { %v1125_v17 = vld [vmem:[#allocation2 + $0x8] sm:$0xff] }
 0xe4a   :  { %v1126_v18 = vpack.c.bf16 %v1125_v17, %v1124_v36 }
 0xe4c   :  { %1863 = vmatmul.mubr.msk.bf16.vlgmr.msra.gmra.mrb[28].mxu0 %vm70_vm0, %v1126_v18 }
 0xe4d   :  { %1882 = vmatprep.mubr.msk.bf16.mxu0 %vm2003_vm1, %v2002_v8  ;;  %1875 = vmatpush3.bf16.msra.mxu0 %v1926_v1  ;;  %v1706_v1 = vld [vmem:[%s2471_s14 + $0x1] ss:$0 sm:$0xff] }
 0xe4e   :  { %1876 = vmatprep.subr.bf16.mxu0 %v2002_v8 }
 0xe51   :  { %1877 = vmatpush3.bf16.msra.mxu0 %v1927_v2 }
 0xe52   :  { %1878 = vmatprep.subr.bf16.mxu0 %v2002_v8 }
 0xe55   :  { %1879 = vmatpush3.bf16.msra.mxu0 %v1928_v3 }
 0xe56   :  { %1880 = vmatprep.subr.bf16.mxu0 %v2002_v8 }
 0xe59   :  { %1881 = vmatpush3.bf16.msra.mxu0 %v1929_v4 }
 0xf1f   :  { %v1189_v20 = vpop.f32.mrb[28].mxu0 }
 0xf20   :  { %v1190_v21 = vadd.f32 %v1672_v19, %v1189_v20  ;;  %v1864_v22 = vpop.f32.mrb[29].mxu0 }
 0xf21   :  { %v1192_v23 = vpop.f32.mrb[30].mxu0 }
 0xf22   :  { %v1196_v24 = vadd.f32 %v1190_v21, %v2296_v58  ;;  %v1193_v25 = vadd.f32 %v1672_v19, %v1192_v23  ;;  %v1865_v26 = vpop.f32.mrb[31].mxu0  ;;  %v1924_v58 = vld [vmem:[%s2465_s10 + $0x10] sm:$0xff]  }
 0xf23   :  { %1867 = vmatpush3.bf16.msra.mxu1 %v1924_v58 }
 0xf24   :  { %v1197_v27 = vadd.f32 %v1193_v25, %v2298_v59  ;;  %v1202_v28 = vsel %vm70_vm0, %v1196_v24, 0.0  ;;  %v1208_v29 = vmul.f32 %v1196_v24, %v1196_v24  ;;  %v1925_v59 = vld [vmem:[%s2465_s10 + $0x18] sm:$0xff]   ;;  %1868 = vmatprep.subr.bf16.mxu1 %v2002_v8 }
 0xf25   :  { %1203 = vadd.xlane.f32.xlu0 %v1202_v28 }
 0xf26   :  { %v1205_v30 = vsel %vm70_vm0, %v1197_v27, 0.0  ;;  %v1210_v31 = vsel %vm70_vm0, %v1208_v29, 0.0  ;;  %v1209_v32 = vmul.f32 %v1197_v27, %v1197_v27 }
 0xf27   :  { %1206 = vadd.xlane.f32.xlu1 %v1205_v30  ;;  %1869 = vmatpush3.bf16.msra.mxu1 %v1925_v59  ;;  %v1698_v30 = vld [vmem:[%s2470_s13 + $0x1] ss:$0 sm:$0xff] }
 0xf28   :  { %v1213_v33 = vsel %vm70_vm0, %v1209_v32, 0.0  ;;  %1886 = vmatprep.subr.bf16.mxu1 %v2002_v8 }
 0xf29   :  { %1211 = vadd.xlane.f32.xlu0 %v1210_v31 }
 0xf2d   :  { %1214 = vadd.xlane.f32.xlu0 %v1213_v33 }
 0xfb2   :  { %v1204_v34 = vpop.xlane.xlu0 %1203 }
 0xfb3   :  { %v1216_v37 = vmul.f32 0.03125, %v1204_v34 }
 0xfb4   :  { %v1207_v38 = vpop.xlane.xlu1 %1206 }
 0xfb5   :  { %v1220_v52 = vmul.f32 %v1216_v37, %v1216_v37  ;;  %v1217_v40 = vmul.f32 0.03125, %v1207_v38  ;;  %v1224_v48 = vsub.f32 %v1196_v24, %v1216_v37 }
 0xfb6   :  { %v1212_v39 = vpop.xlane.xlu0 %1211 }
 0xfb7   :  { %v1218_v41 = vmul.f32 0.03125, %v1212_v39  ;;  %v1221_v43 = vmul.f32 %v1217_v40, %v1217_v40  ;;  %v1225_v53 = vsub.f32 %v1197_v27, %v1217_v40 }
 0xfb9   :  { %v1222_v56 = vsub.f32 %v1218_v41, %v1220_v52 }
 0xfba   :  { %v1215_v42 = vpop.xlane.xlu0 %1214 }
 0xfbb   :  { %v1226_v44 = vadd.f32 1e-12, %v1222_v56  ;;  %v1219_v45 = vmul.f32 0.03125, %v1215_v42 }
 0xfbd   :  { %1982 = vrsqrt.f32 %v1226_v44  ;;  %v1223_v46 = vsub.f32 %v1219_v45, %v1221_v43  ;;  %v1930_v43 = vld [vmem:[%s2473_s16] sm:$0xff]   ;;  %v1931_v44 = vld [vmem:[%s2473_s16 + $0x8] sm:$0xff]  }
 0xfbf   :  { %v1227_v47 = vadd.f32 1e-12, %v1223_v46 }
 0xfc1   :  { %1984 = vrsqrt.f32 %v1227_v47 }
 0xfc7   :  { %v1983_v49 = vpop.eup %1982 }
 0xfc8   :  { %v1230_v50 = vmul.f32 %v1983_v49, %v1224_v48 }
 0xfca   :  { %v1238_v57 = vmul.f32 %v1678_v51, %v1230_v50 }
 0xfcb   :  { %v1985_v54 = vpop.eup %1984 }
 0xfcc   :  { %v1231_v55 = vmul.f32 %v1985_v54, %v1225_v53  ;;  %v1246_v62 = vadd.f32 %v1679_v60, %v1238_v57 }
 0xfce   :  { %v1239_v61 = vmul.f32 %v1678_v51, %v1231_v55 }
 0xfd0   :  { %v1247_v63 = vadd.f32 %v1679_v60, %v1239_v61 }
 0xfd2   :  { %v1248_v0 = vpack.c.bf16 %v1247_v63, %v1246_v62 }
 0xfd4   :  { %1871 = vmatmul.mubr.msk.bf16.vlgmr.msra.gmra.mrb[24].mxu1 %vm70_vm0, %v1248_v0 }
 0xfd5   :  { %1890 = vmatprep.mubr.msk.bf16.mxu1 %vm2003_vm1, %v2002_v8  ;;  %1887 = vmatpush3.bf16.msra.mxu1 %v1930_v43 }
 0xfd6   :  { %1888 = vmatprep.subr.bf16.mxu1 %v2002_v8 }
 0xfd9   :  { %1889 = vmatpush3.bf16.msra.mxu1 %v1931_v44 }
 0xfda   :  { %1894 = vmatprep.subr.bf16.mxu1 %v2002_v8 }
0x10a7   :  { %v1311_v6 = vpop.f32.mrb[24].mxu1 }
0x10a8   :  { %v1312_v7 = vadd.f32 %v1685_v5, %v1311_v6  ;;  %v1872_v9 = vpop.f32.mrb[25].mxu1 }
0x10a9   :  { %v1314_v10 = vpop.f32.mrb[26].mxu1 }
0x10aa   :  { %v1320_v11 = vmul.f32 0.044715, %v1312_v7  ;;  %v1315_v12 = vadd.f32 %v1685_v5, %v1314_v10  ;;  %v1873_v13 = vpop.f32.mrb[27].mxu1  ;;  %v1318_v24 = vmul.f32 0.5, %v1312_v7 }
0x10ab   :  { %v1932_v13 = vld [vmem:[%s2474_s18] sm:$0xff]  }
0x10ac   :  { %v1322_v14 = vmul.f32 %v1320_v11, %v1312_v7  ;;  %v1321_v15 = vmul.f32 0.044715, %v1315_v12  ;;  %v1319_v25 = vmul.f32 0.5, %v1315_v12 }
0x10ae   :  { %v1324_v16 = vmul.f32 %v1322_v14, %v1312_v7  ;;  %v1323_v35 = vmul.f32 %v1321_v15, %v1315_v12  ;;  %v1933_v14 = vld [vmem:[%s2474_s18 + $0x8] sm:$0xff]   ;;  %v1708_v15 = vld [vmem:[%s2475_s17] ss:$0 sm:$0xff] }
0x10b0   :  { %v1326_v36 = vadd.f32 %v1324_v16, %v1312_v7  ;;  %v1325_v17 = vmul.f32 %v1323_v35, %v1315_v12  ;;  %v1707_v7 = vld [vmem:[%s2472_s15 + $0x1] ss:$0 sm:$0xff] }
0x10b2   :  { %v1328_v18 = vmul.f32 0.7978846, %v1326_v36  ;;  %v1327_v19 = vadd.f32 %v1325_v17, %v1315_v12 }
0x10b4   :  { %1986 = vtanh.f32 %v1328_v18  ;;  %v1329_v20 = vmul.f32 0.7978846, %v1327_v19 }
0x10b6   :  { %1988 = vtanh.f32 %v1329_v20 }
0x10be   :  { %v1987_v21 = vpop.eup %1986 }
0x10bf   :  { %v1332_v22 = vadd.f32 1.0, %v1987_v21 }
0x10c0   :  { %v1989_v23 = vpop.eup %1988 }
0x10c1   :  { %v1333_v26 = vadd.f32 1.0, %v1989_v23  ;;  %v1334_v27 = vmul.f32 %v1332_v22, %v1318_v24 }
0x10c3   :  { %v1335_v28 = vmul.f32 %v1333_v26, %v1319_v25 }
0x10c5   :  { %v1336_v29 = vpack.c.bf16 %v1335_v28, %v1334_v27 }
0x10c7   :  { %1883 = vmatmul.mubr.msk.bf16.vlgmr.msra.gmra.mrb[32].mxu0 %vm697_vm4, %v1336_v29 }
0x119a   :  { %v1415_v31 = vpop.f32.mrb[32].mxu0 }
0x119b   :  { %v1416_v32 = vadd.f32 %v1698_v30, %v1415_v31  ;;  %v1884_v33 = vpop.f32.mrb[33].mxu0 }
0x119c   :  { %v1418_v58 = vpop.f32.mrb[34].mxu0 }
0x119d   :  { %v1422_v59 = vadd.f32 %v1416_v32, %v1246_v62  ;;  %v1419_v34 = vadd.f32 %v1698_v30, %v1418_v58  ;;  %v1885_v37 = vpop.f32.mrb[35].mxu0 }
0x119f   :  { %v1423_v38 = vadd.f32 %v1419_v34, %v1247_v63  ;;  %v1428_v39 = vsel %vm70_vm0, %v1422_v59, 0.0  ;;  %v1434_v52 = vmul.f32 %v1422_v59, %v1422_v59 }
0x11a0   :  { %1429 = vadd.xlane.f32.xlu0 %v1428_v39 }
0x11a1   :  { %v1431_v40 = vsel %vm70_vm0, %v1423_v38, 0.0  ;;  %v1435_v41 = vmul.f32 %v1423_v38, %v1423_v38  ;;  %v1436_v56 = vsel %vm70_vm0, %v1434_v52, 0.0 }
0x11a2   :  { %1432 = vadd.xlane.f32.xlu1 %v1431_v40 }
0x11a3   :  { %v1439_v42 = vsel %vm70_vm0, %v1435_v41, 0.0 }
0x11a4   :  { %1437 = vadd.xlane.f32.xlu0 %v1436_v56 }
0x11a6   :  { %1440 = vadd.xlane.f32.xlu1 %v1439_v42 }
0x122d   :  { %v1430_v45 = vpop.xlane.xlu0 %1429 }
0x122e   :  { %v1442_v46 = vmul.f32 0.03125, %v1430_v45 }
0x122f   :  { %v1433_v47 = vpop.xlane.xlu1 %1432 }
0x1230   :  { %v1443_v48 = vmul.f32 0.03125, %v1433_v47  ;;  %v1446_v50 = vmul.f32 %v1442_v46, %v1442_v46  ;;  %v1450_v63 = vsub.f32 %v1422_v59, %v1442_v46 }
0x1231   :  { %v1438_v49 = vpop.xlane.xlu0 %1437 }
0x1232   :  { %v1444_v51 = vmul.f32 0.03125, %v1438_v49  ;;  %v1447_v54 = vmul.f32 %v1443_v48, %v1443_v48  ;;  %v1451_v2 = vsub.f32 %v1423_v38, %v1443_v48 }
0x1233   :  { %v1441_v53 = vpop.xlane.xlu1 %1440 }
0x1234   :  { %v1448_v55 = vsub.f32 %v1444_v51, %v1446_v50  ;;  %v1445_v57 = vmul.f32 0.03125, %v1441_v53 }
0x1236   :  { %v1452_v60 = vadd.f32 1e-12, %v1448_v55  ;;  %v1449_v61 = vsub.f32 %v1445_v57, %v1447_v54 }
0x1238   :  { %1990 = vrsqrt.f32 %v1452_v60  ;;  %v1453_v62 = vadd.f32 1e-12, %v1449_v61 }
0x123a   :  { %1992 = vrsqrt.f32 %v1453_v62 }
0x1242   :  { %v1991_v0 = vpop.eup %1990 }
0x1243   :  { %v1456_v3 = vmul.f32 %v1991_v0, %v1450_v63 }
0x1244   :  { %v1993_v4 = vpop.eup %1992 }
0x1245   :  { %v1464_v5 = vmul.f32 %v1706_v1, %v1456_v3  ;;  %v1457_v6 = vmul.f32 %v1993_v4, %v1451_v2 }
0x1247   :  { %v1465_v9 = vmul.f32 %v1706_v1, %v1457_v6  ;;  %v1472_v10 = vadd.f32 %v1707_v7, %v1464_v5 }
0x1249   :  { %v1473_v11 = vadd.f32 %v1707_v7, %v1465_v9 }
0x124b   :  { %v1474_v12 = vpack.c.bf16 %v1473_v11, %v1472_v10 }
0x124d   :  { %1891 = vmatmul.mubr.msk.bf16.vlgmr.msra.gmra.mrb[28].mxu1 %vm70_vm0, %v1474_v12 }
0x124e   :  { %1898 = vmatprep.mubr.msk.bf16.mxu1 %vm2003_vm1, %v2002_v8  ;;  %1895 = vmatpush3.bf16.msra.mxu1 %v1932_v13 }
0x124f   :  { %1896 = vmatprep.subr.bf16.mxu1 %v2002_v8  ;;  %v1712_v8 = vld [vmem:[%s2476_s19] ss:$0 sm:$0xff] }
0x1252   :  { %1897 = vmatpush3.bf16.msra.mxu1 %v1933_v14 }
0x1320   :  { %v1535_v16 = vpop.f32.mrb[28].mxu1 }
0x1321   :  { %v1536_v35 = vadd.f32 %v1708_v15, %v1535_v16  ;;  %v1892_v36 = vpop.f32.mrb[29].mxu1 }
0x1322   :  { %v1538_v17 = vpop.f32.mrb[30].mxu1 }
0x1323   :  { %v1539_v18 = vadd.f32 %v1708_v15, %v1538_v17  ;;  %v1893_v19 = vpop.f32.mrb[31].mxu1  ;;  %1994 = vtanh.f32 %v1536_v35 }
0x1325   :  { %1996 = vtanh.f32 %v1539_v18 }
0x132d   :  { %v1995_v20 = vpop.eup %1994 }
0x132f   :  { %v1997_v21 = vpop.eup %1996 }
0x1330   :  { %v1544_v22 = vpack.c.bf16 %v1997_v21, %v1995_v20 }
0x1332   :  { %1899 = vmatmul.mubr.msk.bf16.vlgmr.msra.gmra.mrb[32].mxu1 %vm70_vm0, %v1544_v22 }
0x1405   :  { %v1605_v23 = vpop.f32.mrb[32].mxu1 }
0x1406   :  { %v1606_v24 = vadd.f32 %v1712_v8, %v1605_v23  ;;  %v1900_v25 = vpop.f32.mrb[33].mxu1 }
0x1407   :  { %v1608_v26 = vpop.f32.mrb[34].mxu1 }
0x1408   :  { %v1612_v27 = vmul.f32 0.5, %v1606_v24  ;;  %v1609_v28 = vadd.f32 %v1712_v8, %v1608_v26  ;;  %v1901_v29 = vpop.f32.mrb[35].mxu1 }
0x140a   :  { %1998 = vtanh.f32 %v1612_v27  ;;  %v1613_v30 = vmul.f32 0.5, %v1609_v28 }
0x140c   :  { %2000 = vtanh.f32 %v1613_v30 }
0x1414   :  { %v1999_v31 = vpop.eup %1998 }
0x1415   :  { %v1616_v32 = vadd.f32 1.0, %v1999_v31 }
0x1416   :  { %v2001_v33 = vpop.eup %2000 }
0x1417   :  { %v1618_v58 = vmul.f32 0.5, %v1616_v32  ;;  %v1617_v59 = vadd.f32 1.0, %v2001_v33 }
0x1419   :  { %1620 = vst [vmem:[%s2477_s20] sm:$0xff] %v1618_v58  ;;  %v1619_v34 = vmul.f32 0.5, %v1617_v59 }
0x141b   :  { %1621 = vst [vmem:[%s2477_s20 + $0x8] sm:$0xff] %v1619_v34 }

</bundles_post_ra>
